<compile_context>
chip_gen: v7x
topology: tpu7x:2x2x1
jax: 0.10.0
libtpu: 0.0.40
codegen_flags: <defaults>
</compile_context>

<pallas_src>
import math
from functools import partial

import jax
import jax.numpy as jnp
from jax.experimental import pallas as pl
from jax.experimental.pallas import tpu as pltpu

BN_EPS = 1e-3  # torchvision EfficientNetV2 uses BatchNorm2d(eps=1e-3)

_VMEM_LIMIT = None


def _round_up(x, m):
    return ((x + m - 1) // m) * m


def _vmem_limit():
    global _VMEM_LIMIT
    if _VMEM_LIMIT is None:
        cap = 64 * 1024 * 1024                      # conservative (v7x-class) default
        try:
            cap = int(pltpu.get_tpu_info().vmem_capacity_bytes)
        except Exception:
            pass
        _VMEM_LIMIT = min(int(cap * 0.72), 100 * 1024 * 1024)
    return _VMEM_LIMIT


def _cparams(semantics):
    return pltpu.CompilerParams(dimension_semantics=semantics,
                                vmem_limit_bytes=_vmem_limit())


def _apply_act(y, act):
    if act == "silu":
        return y * jax.nn.sigmoid(y)
    if act == "sigmoid":
        return jax.nn.sigmoid(y)
    return y


_TILE_CANDS = (2048, 1536, 1024, 768, 640, 512, 384, 256, 128)


def _pick_div(n, limit=2304):
    """Largest lane-friendly tile size dividing n (n itself when small enough)."""
    if n <= limit:
        return n
    for c in _TILE_CANDS:
        if c <= limit and n % c == 0:
            return c
    return 128


def _matmul_tiles(M, Kpad, Npad, has_res):
    if M <= 1024:
        TM = _round_up(M, 16)
    elif M <= 8192:
        TM = 512
    else:
        TM = 1024
    TN = _pick_div(Npad)
    TK = _pick_div(Kpad)
    budget = int(0.45 * _vmem_limit())

    def cost(tm, tn, tk):
        c = 2 * tm * tk * 2 + 2 * tk * tn * 2 + 2 * tm * tn * 2 + tm * tn * 4 + 16 * tn
        if has_res:
            c += 2 * tm * tn * 2
        return c

    for _ in range(12):
        if cost(TM, TN, TK) <= budget:
            break
        if TK > 128 and TK >= TN:
            TK = _pick_div(Kpad, limit=max(128, TK // 2))
        elif TN > 128:
            TN = _pick_div(Npad, limit=max(128, TN // 2))
        elif TM > 16:
            TM = max(16, _round_up(TM // 2, 16))
        else:
            break
    Mpad = _round_up(M, TM)
    return TM, Mpad, TN, TK


# ----------------------------------------------------------------------------------
# Kernel bodies
# ----------------------------------------------------------------------------------
def _mm_kernel(*refs, act, has_se, has_res):
    # refs: x, w, scale, bias, [se], [res], out, acc_scratch
    x_ref, w_ref, s_ref, b_ref = refs[:4]
    pos = 4
    se_ref = res_ref = None
    if has_se:
        se_ref = refs[pos]; pos += 1
    if has_res:
        res_ref = refs[pos]; pos += 1
    o_ref, acc_ref = refs[pos], refs[pos + 1]

    k = pl.program_id(3)

    @pl.when(k == 0)
    def _init():
        acc_ref[...] = jnp.zeros_like(acc_ref)

    x = x_ref[0]                                   # (TM, TK) bf16
    if has_se:
        x = x * se_ref[0]                          # bf16 * bf16 (1, TK) broadcast
    acc_ref[...] += jnp.dot(x, w_ref[...], preferred_element_type=jnp.float32)

    @pl.when(k == pl.num_programs(3) - 1)
    def _finalize():
        y = acc_ref[...] * s_ref[...] + b_ref[...]   # folded-BN affine (f32)
        y = _apply_act(y, act)
        if has_res:
            y = y + res_ref[0].astype(jnp.float32)
        o_ref[0] = y.astype(o_ref.dtype)


def _conv3x3_kernel(*refs, act, has_res, oh, ow):
    # Stride-1 3x3 conv from a halo'd NHWC block: 9 shifted-slice MXU dots.
    # refs: x (1, oh+2, ow+2, TK), w (9, TK, TN), scale (1, TN), bias (1, TN),
    #       [res (1, oh*ow, TN)], out (1, oh*ow, TN), acc (oh*ow, TN) f32 scratch
    x_ref, w_ref, s_ref, b_ref = refs[:4]
    pos = 4
    res_ref = None
    if has_res:
        res_ref = refs[pos]; pos += 1
    o_ref, acc_ref = refs[pos], refs[pos + 1]

    k = pl.program_id(2)

    @pl.when(k == 0)
    def _init():
        acc_ref[...] = jnp.zeros_like(acc_ref)

    tk = x_ref.shape[-1]
    part = None
    for dy in range(3):
        for dx in range(3):
            xs = x_ref[0, dy:dy + oh, dx:dx + ow, :].reshape(oh * ow, tk)
            d = jnp.dot(xs, w_ref[3 * dy + dx], preferred_element_type=jnp.float32)
            part = d if part is None else part + d
    acc_ref[...] += part

    @pl.when(k == pl.num_programs(2) - 1)
    def _finalize():
        y = acc_ref[...] * s_ref[...] + b_ref[...]
        y = _apply_act(y, act)
        if has_res:
            y = y + res_ref[0].astype(jnp.float32)
        o_ref[0] = y.astype(o_ref.dtype)


def _dw_s1_kernel(x_ref, w_ref, s_ref, b_ref, o_ref, p_ref, *, oh, ow, row_chunk):
    # x_ref: (1, oh+2, ow+2, TC) halo'd NHWC block, w_ref: (9, TC)
    # Output rows are produced in bounded chunks so the f32 accumulator stays small;
    # the SE global-average-pool is fused as a second (1, 1, TC) output.
    tc = o_ref.shape[-1]
    psum = jnp.zeros((1, tc), jnp.float32)
    r = 0
    while r < oh:
        th = min(row_chunk, oh - r)
        acc = jnp.zeros((th, ow, tc), jnp.float32)
        for dy in range(3):
            for dx in range(3):
                acc = acc + (x_ref[0, r + dy:r + dy + th, dx:dx + ow, :]
                             .astype(jnp.float32)
                             * w_ref[3 * dy + dx].astype(jnp.float32))
        y = acc * s_ref[0] + b_ref[0]
        y = y * jax.nn.sigmoid(y)                                   # SiLU
        o_ref[0, r:r + th, :, :] = y.astype(o_ref.dtype)
        psum = psum + jnp.sum(y, axis=(0, 1)).reshape(1, tc)
        r += th
    p_ref[0] = psum * (1.0 / float(oh * ow))


def _dw_s2_kernel(p_ref, w_ref, s_ref, b_ref, o_ref):
    # p_ref: (9, TM, TC) patch layout, w_ref: (9, TC)
    tm, tc = o_ref.shape
    acc = jnp.zeros((tm, tc), jnp.float32)
    for j in range(9):
        acc = acc + p_ref[j].astype(jnp.float32) * w_ref[j].astype(jnp.float32)
    y = acc * s_ref[...] + b_ref[...]
    o_ref[...] = (y * jax.nn.sigmoid(y)).astype(o_ref.dtype)


def _pool_kernel(x_ref, o_ref):
    x = x_ref[0].astype(jnp.float32)                                # (HW, TC)
    o_ref[0] = jnp.sum(x, axis=0, keepdims=True) * (1.0 / float(x.shape[0]))


# ----------------------------------------------------------------------------------
# Pallas-call wrappers
# ----------------------------------------------------------------------------------
def matmul_affine(x, w, scale, bias, act="none", se=None, residual=None):
    """y = act((x @ w) * scale + bias) (+ residual); optional per-(batch, K) SE scale.

    x: (B, M, K) (K may already contain zero padding); w: (Kw, N) with Kw <= K.
    Returns (B, M, round_up(N, 128)) bf16 -- padded output channels are zero."""
    B, M, K = x.shape
    Kw, N = w.shape
    Kpad = _round_up(max(K, Kw), 128)
    Npad = _round_up(N, 128)
    has_se = se is not None
    has_res = residual is not None
    TM, Mpad, TN, TK = _matmul_tiles(M, Kpad, Npad, has_res)

    xp = x.astype(jnp.bfloat16)
    if Mpad != M or Kpad != K:
        xp = jnp.pad(xp, ((0, 0), (0, Mpad - M), (0, Kpad - K)))
    wp = jnp.pad(w.astype(jnp.bfloat16), ((0, Kpad - Kw), (0, Npad - N)))
    sp = jnp.pad(scale.astype(jnp.float32).reshape(1, -1), ((0, 0), (0, Npad - N)))
    bp = jnp.pad(bias.astype(jnp.float32).reshape(1, -1), ((0, 0), (0, Npad - N)))

    inputs = [xp, wp, sp, bp]
    in_specs = [
        pl.BlockSpec((1, TM, TK), lambda bi, mi, ni, ki: (bi, mi, ki)),
        pl.BlockSpec((TK, TN), lambda bi, mi, ni, ki: (ki, ni)),
        pl.BlockSpec((1, TN), lambda bi, mi, ni, ki: (0, ni)),
        pl.BlockSpec((1, TN), lambda bi, mi, ni, ki: (0, ni)),
    ]
    if has_se:
        sep = se.astype(jnp.bfloat16).reshape(B, 1, -1)
        if sep.shape[-1] != Kpad:
            sep = jnp.pad(sep, ((0, 0), (0, 0), (0, Kpad - sep.shape[-1])))
        inputs.append(sep)
        in_specs.append(pl.BlockSpec((1, 1, TK), lambda bi, mi, ni, ki: (bi, 0, ki)))
    if has_res:
        rp = residual.astype(jnp.bfloat16)
        if rp.shape[1] != Mpad or rp.shape[2] != Npad:
            rp = jnp.pad(rp, ((0, 0), (0, Mpad - rp.shape[1]), (0, Npad - rp.shape[2])))
        inputs.append(rp)
        in_specs.append(pl.BlockSpec((1, TM, TN), lambda bi, mi, ni, ki: (bi, mi, ni)))

    out = pl.pallas_call(
        partial(_mm_kernel, act=act, has_se=has_se, has_res=has_res),
        out_shape=jax.ShapeDtypeStruct((B, Mpad, Npad), jnp.bfloat16),
        grid=(B, Mpad // TM, Npad // TN, Kpad // TK),
        in_specs=in_specs,
        out_specs=pl.BlockSpec((1, TM, TN), lambda bi, mi, ni, ki: (bi, mi, ni)),
        scratch_shapes=[pltpu.VMEM((TM, TN), jnp.float32)],
        compiler_params=_cparams(("parallel", "parallel", "parallel", "arbitrary")),
    )(*inputs)
    if Mpad != M:
        out = out[:, :M, :]
    return out


def _conv3x3_s1_halo(x, w9, scale, bias, *, act, residual):
    """Stride-1 3x3 full conv via in-kernel halo'd 9-tap dots.  Returns
    (B, H*W, Npad) bf16, or None when the tile set would not fit VMEM."""
    B, H, W, Cp = x.shape
    cin, cout = w9.shape[1], w9.shape[2]
    Kpad = Cp
    Npad = _round_up(cout, 128)
    M = H * W
    has_res = residual is not None
    TN = _pick_div(Npad)
    TK = _pick_div(Kpad)
    budget = int(0.45 * _vmem_limit())

    def cost(tn, tk):
        c = (2 * (H + 2) * (W + 2) * tk * 2          # halo'd x (double buffered)
             + 2 * 9 * tk * tn * 2                   # weights
             + 2 * M * tn * 2                        # output
             + M * tn * 4 + 16 * tn)                 # f32 accumulator + scale/bias
        if has_res:
            c += 2 * M * tn * 2
        return c

    for _ in range(10):
        if cost(TN, TK) <= budget:
            break
        if TK > 128 and TK >= TN:
            TK = _pick_div(Kpad, limit=max(128, TK // 2))
        elif TN > 128:
            TN = _pick_div(Npad, limit=max(128, TN // 2))
        else:
            break
    if cost(TN, TK) > budget:
        return None

    xp = jnp.pad(x, ((0, 0), (1, 1), (1, 1), (0, 0)))
    wp = jnp.pad(w9.astype(jnp.bfloat16), ((0, 0), (0, Kpad - cin), (0, Npad - cout)))
    sp = jnp.pad(scale.astype(jnp.float32).reshape(1, -1), ((0, 0), (0, Npad - cout)))
    bp = jnp.pad(bias.astype(jnp.float32).reshape(1, -1), ((0, 0), (0, Npad - cout)))

    inputs = [xp, wp, sp, bp]
    in_specs = [
        pl.BlockSpec((1, H + 2, W + 2, TK), lambda bi, ni, ki: (bi, 0, 0, ki)),
        pl.BlockSpec((9, TK, TN), lambda bi, ni, ki: (0, ki, ni)),
        pl.BlockSpec((1, TN), lambda bi, ni, ki: (0, ni)),
        pl.BlockSpec((1, TN), lambda bi, ni, ki: (0, ni)),
    ]
    if has_res:
        inputs.append(residual.astype(jnp.bfloat16))
        in_specs.append(pl.BlockSpec((1, M, TN), lambda bi, ni, ki: (bi, 0, ni)))

    y = pl.pallas_call(
        partial(_conv3x3_kernel, act=act, has_res=has_res, oh=H, ow=W),
        out_shape=jax.ShapeDtypeStruct((B, M, Npad), jnp.bfloat16),
        grid=(B, Npad // TN, Kpad // TK),
        in_specs=in_specs,
        out_specs=pl.BlockSpec((1, M, TN), lambda bi, ni, ki: (bi, 0, ni)),
        scratch_shapes=[pltpu.VMEM((M, TN), jnp.float32)],
        compiler_params=_cparams(("parallel", "parallel", "arbitrary")),
    )(*inputs)
    return y


def _im2col(x, k, stride, pad):
    n, h, w, c = x.shape
    xp = jnp.pad(x, ((0, 0), (pad, pad), (pad, pad), (0, 0)))
    oh = (h + 2 * pad - k) // stride + 1
    ow = (w + 2 * pad - k) // stride + 1
    cols = []
    for dy in range(k):
        for dx in range(k):
            cols.append(xp[:, dy:dy + stride * oh:stride, dx:dx + stride * ow:stride, :])
    cols = jnp.concatenate(cols, axis=-1)                  # (N, OH, OW, 9*C)
    return cols.reshape(n * oh * ow, k * k * c), oh, ow


def conv3x3_bn_act(x, w, scale, bias, *, stride, act="silu", residual=None):
    """Full 3x3 conv + folded-BN affine + activation (+ residual) on NHWC bf16
    activations whose channels may already be zero-padded to a 128 multiple."""
    B, H, W, Cp = x.shape
    cout = w.shape[-1]
    w9 = w.reshape(9, -1, cout)
    cin = w9.shape[1]
    if stride == 1 and W % 8 == 0 and H * W <= 4096:
        res = residual.reshape(B, H * W, -1) if residual is not None else None
        y = _conv3x3_s1_halo(x, w9, scale, bias, act=act, residual=res)
        if y is not None:
            return y.reshape(B, H, W, -1)
    # TODO(synk): stride-2 / very-large-image 3x3 convs still build im2col patches
    # in plain JAX; an in-kernel strided 9-tap conv would remove that HBM traffic.
    cols, oh, ow = _im2col(x, 3, stride, 1)
    if Cp != cin:
        wflat = jnp.pad(w9, ((0, 0), (0, Cp - cin), (0, 0))).reshape(9 * Cp, cout)
    else:
        wflat = w
    res = (residual.reshape(1, B * H * W, -1)
           if (residual is not None and stride == 1) else None)
    y = matmul_affine(cols.reshape(1, B * oh * ow, -1), wflat, scale, bias,
                      act=act, residual=res)
    return y.reshape(B, oh, ow, -1)


def dwconv3x3_s1(x, w, scale, bias):
    """Stride-1 3x3 depthwise conv + BN + SiLU on NHWC with fused global-avg-pool.

    x: (B, H, W, Cp) bf16 (channels 128-padded).  Returns (y (B,H,W,Cp) bf16,
    pooled (B, 1, Cp) f32)."""
    B, H, W, Cp = x.shape
    c = w.shape[1]
    TC = 128
    xp = jnp.pad(x, ((0, 0), (1, 1), (1, 1), (0, 0)))
    wp = jnp.pad(w.astype(jnp.bfloat16), ((0, 0), (0, Cp - c)))
    sp = jnp.pad(scale.astype(jnp.float32).reshape(1, -1), ((0, 0), (0, Cp - c)))
    bp = jnp.pad(bias.astype(jnp.float32).reshape(1, -1), ((0, 0), (0, Cp - c)))
    row_chunk = max(1, 256 // max(1, W))               # keep the f32 acc value small

    y, pooled = pl.pallas_call(
        partial(_dw_s1_kernel, oh=H, ow=W, row_chunk=row_chunk),
        out_shape=(jax.ShapeDtypeStruct((B, H, W, Cp), jnp.bfloat16),
                   jax.ShapeDtypeStruct((B, 1, Cp), jnp.float32)),
        grid=(B, Cp // TC),
        in_specs=[
            pl.BlockSpec((1, H + 2, W + 2, TC), lambda bi, ci: (bi, 0, 0, ci)),
            pl.BlockSpec((9, TC), lambda bi, ci: (0, ci)),
            pl.BlockSpec((1, TC), lambda bi, ci: (0, ci)),
            pl.BlockSpec((1, TC), lambda bi, ci: (0, ci)),
        ],
        out_specs=(pl.BlockSpec((1, H, W, TC), lambda bi, ci: (bi, 0, 0, ci)),
                   pl.BlockSpec((1, 1, TC), lambda bi, ci: (bi, 0, ci))),
        compiler_params=_cparams(("parallel", "parallel")),
    )(xp, wp, sp, bp)
    return y, pooled


def _dw_patches_t(x, k, stride, pad):
    # (9, B*OH*OW, C) patch layout (tap axis leading -> no sublane padding waste)
    n, h, w, c = x.shape
    xp = jnp.pad(x, ((0, 0), (pad, pad), (pad, pad), (0, 0)))
    oh = (h + 2 * pad - k) // stride + 1
    ow = (w + 2 * pad - k) // stride + 1
    pats = []
    for dy in range(k):
        for dx in range(k):
            pats.append(xp[:, dy:dy + stride * oh:stride, dx:dx + stride * ow:stride, :]
                        .reshape(n * oh * ow, c))
    return jnp.stack(pats, axis=0), oh, ow


def dwconv3x3_s2(x, w, scale, bias):
    """Stride-2 3x3 depthwise conv + BN + SiLU (only 2 layers in the net)."""
    B, H, W, Cp = x.shape
    c = w.shape[1]
    pats, oh, ow = _dw_patches_t(x, 3, 2, 1)
    M = B * oh * ow
    TC = 128
    TM = _round_up(M, 16) if M <= 1024 else 512
    Mpad = _round_up(M, TM)
    pp = jnp.pad(pats, ((0, 0), (0, Mpad - M), (0, 0)))
    wp = jnp.pad(w.astype(jnp.bfloat16), ((0, 0), (0, Cp - c)))
    sp = jnp.pad(scale.astype(jnp.float32).reshape(1, -1), ((0, 0), (0, Cp - c)))
    bp = jnp.pad(bias.astype(jnp.float32).reshape(1, -1), ((0, 0), (0, Cp - c)))

    y = pl.pallas_call(
        _dw_s2_kernel,
        out_shape=jax.ShapeDtypeStruct((Mpad, Cp), jnp.bfloat16),
        grid=(Mpad // TM, Cp // TC),
        in_specs=[
            pl.BlockSpec((9, TM, TC), lambda mi, ci: (0, mi, ci)),
            pl.BlockSpec((9, TC), lambda mi, ci: (0, ci)),
            pl.BlockSpec((1, TC), lambda mi, ci: (0, ci)),
            pl.BlockSpec((1, TC), lambda mi, ci: (0, ci)),
        ],
        out_specs=pl.BlockSpec((TM, TC), lambda mi, ci: (mi, ci)),
        compiler_params=_cparams(("parallel", "parallel")),
    )(pp, wp, sp, bp)
    if Mpad != M:
        y = y[:M]
    return y.reshape(B, oh, ow, Cp), oh, ow


def global_pool(x):
    """x: (B, HW, Cp) with Cp a multiple of 128 -> (B, Cp) f32 mean over HW."""
    B, HW, Cp = x.shape
    TC = 128
    pooled = pl.pallas_call(
        _pool_kernel,
        out_shape=jax.ShapeDtypeStruct((B, 1, Cp), jnp.float32),
        grid=(B, Cp // TC),
        in_specs=[pl.BlockSpec((1, HW, TC), lambda bi, ci: (bi, 0, ci))],
        out_specs=pl.BlockSpec((1, 1, TC), lambda bi, ci: (bi, 0, ci)),
        compiler_params=_cparams(("parallel", "parallel")),
    )(x)
    return pooled[:, 0, :]


# ----------------------------------------------------------------------------------
# Block forwards (jitted so identical repeated blocks share one compilation)
# ----------------------------------------------------------------------------------
@jax.jit
def stem_forward(x, p):
    return conv3x3_bn_act(x.astype(jnp.bfloat16), p["w"], p["s"], p["b"],
                          stride=2, act="silu")


@partial(jax.jit, static_argnames=("stride", "use_res"))
def fused_block_expand1(x, p, *, stride, use_res):
    # FusedMBConv, expand_ratio == 1: 3x3 conv + BN + SiLU (+ residual)
    res = x if use_res else None
    return conv3x3_bn_act(x, p["conv"]["w"], p["conv"]["s"], p["conv"]["b"],
                          stride=stride, act="silu", residual=res)


@partial(jax.jit, static_argnames=("stride", "use_res"))
def fused_block(x, p, *, stride, use_res):
    # FusedMBConv: fused 3x3 expand conv (SiLU) + 1x1 project conv (+ residual)
    B, H, W, Cp = x.shape
    h = conv3x3_bn_act(x, p["expand"]["w"], p["expand"]["s"], p["expand"]["b"],
                       stride=stride, act="silu")
    _, oh, ow, Ep = h.shape
    res = x.reshape(1, B * H * W, Cp) if use_res else None
    y = matmul_affine(h.reshape(1, B * oh * ow, Ep),
                      p["project"]["w"], p["project"]["s"], p["project"]["b"],
                      act="none", residual=res)
    return y.reshape(B, oh, ow, -1)


@partial(jax.jit, static_argnames=("stride", "use_res"))
def mb_block(x, p, *, stride, use_res):
    # MBConv: 1x1 expand -> 3x3 depthwise (+fused pool) -> SE (plain JAX FCs, scale
    # fused into projection) -> 1x1 project (+ residual)
    B, H, W, Cp = x.shape
    exp_c = p["dw"]["w"].shape[1]

    hexp = matmul_affine(x.reshape(1, B * H * W, Cp),
                         p["expand"]["w"], p["expand"]["s"], p["expand"]["b"],
                         act="silu")
    Ep = hexp.shape[-1]
    hexp = hexp.reshape(B, H, W, Ep)

    if stride == 1:
        hdw, pooled = dwconv3x3_s1(hexp, p["dw"]["w"], p["dw"]["s"], p["dw"]["b"])
        oh, ow = H, W
        pooled = pooled.reshape(B, Ep)
    else:
        hdw, oh, ow = dwconv3x3_s2(hexp, p["dw"]["w"], p["dw"]["s"], p["dw"]["b"])
        pooled = global_pool(hdw.reshape(B, oh * ow, Ep))

    # Squeeze-Excitation FCs (tiny; launch-overhead dominated in Pallas -> plain JAX)
    pooled_r = pooled[:, :exp_c].astype(jnp.float32)
    s1 = jax.nn.silu(pooled_r @ p["se_fc1_w"] + p["se_fc1_b"])
    s2 = jax.nn.sigmoid(s1 @ p["se_fc2_w"] + p["se_fc2_b"])        # (B, exp_c)
    se = jnp.pad(s2, ((0, 0), (0, Ep - exp_c))) if Ep != exp_c else s2

    res = x.reshape(B, H * W, Cp) if use_res else None
    y = matmul_affine(hdw.reshape(B, oh * ow, Ep),
                      p["project"]["w"], p["project"]["s"], p["project"]["b"],
                      act="none", se=se, residual=res)
    return y.reshape(B, oh, ow, -1)


@jax.jit
def head_forward(x, p):
    # 1x1 conv 640->1280 + BN + SiLU, global avg pool, Linear(1280,1000), Linear(1000,K)
    B, H, W, Cp = x.shape
    y = matmul_affine(x.reshape(1, B * H * W, Cp), p["conv"]["w"], p["conv"]["s"],
                      p["conv"]["b"], act="silu")                  # (1, BHW, 1280)
    pooled = global_pool(y.reshape(B, H * W, -1))                  # (B, 1280) f32
    # TODO(synk): Dropout(p=0.4) of the backbone classifier is identity (eval mode).
    feat = pooled @ p["fc_w"] + p["fc_b"]                          # f32, 1280 -> 1000
    logits = feat @ p["cls_w"] + p["cls_b"]                        # f32, 1000 -> K
    return logits


# ----------------------------------------------------------------------------------
# Deterministic synthetic parameters (shapes follow torchvision efficientnet_v2_l)
# ----------------------------------------------------------------------------------
# (block_type, expand_ratio, kernel, stride, in_ch, out_ch, num_layers)
V2_L_CONFIG = [
    ("fused", 1, 3, 1, 32, 32, 4),
    ("fused", 4, 3, 2, 32, 64, 7),
    ("fused", 4, 3, 2, 64, 96, 7),
    ("mb", 4, 3, 2, 96, 192, 10),
    ("mb", 6, 3, 1, 192, 224, 19),
    ("mb", 6, 3, 2, 224, 384, 25),
    ("mb", 6, 3, 1, 384, 640, 7),
]


class _Gen:
    def __init__(self, seed):
        self._key = jax.random.PRNGKey(seed)

    def __call__(self):
        self._key, k = jax.random.split(self._key)
        return k


def _bn_affine(gen, cout):
    gamma = 1.0 + 0.1 * jax.random.normal(gen(), (cout,), jnp.float32)
    beta = 0.1 * jax.random.normal(gen(), (cout,), jnp.float32)
    mean = 0.1 * jax.random.normal(gen(), (cout,), jnp.float32)
    var = 1.0 + 0.1 * jnp.abs(jax.random.normal(gen(), (cout,), jnp.float32))
    scale = gamma / jnp.sqrt(var + BN_EPS)
    bias = beta - mean * scale
    return scale, bias


def _conv_bn(gen, fan_in, cout):
    w = (jax.random.normal(gen(), (fan_in, cout), jnp.float32)
         * math.sqrt(2.0 / fan_in)).astype(jnp.bfloat16)
    s, b = _bn_affine(gen, cout)
    return {"w": w, "s": s, "b": b}


def _dw_bn(gen, k, c):
    w = (jax.random.normal(gen(), (k * k, c), jnp.float32)
         * math.sqrt(2.0 / (k * k))).astype(jnp.bfloat16)
    s, b = _bn_affine(gen, c)
    return {"w": w, "s": s, "b": b}


def _linear(gen, cin, cout, kaiming=False):
    if kaiming:                       # nn.init.kaiming_uniform_(weight); bias = 0
        bound = math.sqrt(6.0 / cin)
        w = jax.random.uniform(gen(), (cin, cout), jnp.float32, -bound, bound)
        b = jnp.zeros((cout,), jnp.float32)
    else:                             # PyTorch default Linear init
        bound = 1.0 / math.sqrt(cin)
        w = jax.random.uniform(gen(), (cin, cout), jnp.float32, -bound, bound)
        b = jax.random.uniform(gen(), (cout,), jnp.float32, -bound, bound)
    return w, b


def build_params(num_classes, seed=0):
    gen = _Gen(seed)
    params = {"stem": _conv_bn(gen, 3 * 3 * 3, 32)}
    blocks = []
    for (btype, expand, k, stride, cin_stage, cout_stage, num) in V2_L_CONFIG:
        for i in range(num):
            cin = cin_stage if i == 0 else cout_stage
            s = stride if i == 0 else 1
            exp_c = cin * expand
            if btype == "fused":
                if expand == 1:
                    bp = {"conv": _conv_bn(gen, k * k * cin, cout_stage)}
                else:
                    bp = {"expand": _conv_bn(gen, k * k * cin, exp_c),
                          "project": _conv_bn(gen, exp_c, cout_stage)}
            else:
                sq = max(1, cin // 4)
                fc1_w, fc1_b = _linear(gen, exp_c, sq)
                fc2_w, fc2_b = _linear(gen, sq, exp_c)
                bp = {"expand": _conv_bn(gen, cin, exp_c),
                      "dw": _dw_bn(gen, k, exp_c),
                      "se_fc1_w": fc1_w, "se_fc1_b": fc1_b,
                      "se_fc2_w": fc2_w, "se_fc2_b": fc2_b,
                      "project": _conv_bn(gen, exp_c, cout_stage)}
            blocks.append((btype, expand, s, cin, cout_stage, bp))
    params["blocks"] = blocks
    head = {"conv": _conv_bn(gen, 640, 1280)}
    head["fc_w"], head["fc_b"] = _linear(gen, 1280, 1000)            # backbone classifier
    head["cls_w"], head["cls_b"] = _linear(gen, 1000, num_classes, kaiming=True)
    params["head"] = head
    return params


# ----------------------------------------------------------------------------------
# Full forward pass (Efficientnet_v2_l.forward)
# ----------------------------------------------------------------------------------
def efficientnet_v2_l_forward(x_nchw, params):
    x = jnp.transpose(x_nchw, (0, 2, 3, 1))                         # NCHW -> NHWC
    x = stem_forward(x, params["stem"])
    for (btype, expand, stride, cin, cout, bp) in params["blocks"]:
        use_res = (stride == 1 and cin == cout)
        if btype == "fused":
            if expand == 1:
                x = fused_block_expand1(x, bp, stride=stride, use_res=use_res)
            else:
                x = fused_block(x, bp, stride=stride, use_res=use_res)
        else:
            x = mb_block(x, bp, stride=stride, use_res=use_res)
    return head_forward(x, params["head"])                          # (N, num_classes)


if __name__ == "__main__":
    num_classes = 10
    params = build_params(num_classes, seed=0)
    x = jax.random.normal(jax.random.PRNGKey(0), (2, 3, 64, 64), jnp.float32)
    logits = efficientnet_v2_l_forward(x, params)
    jax.block_until_ready(logits)
    assert logits.shape == (2, num_classes), logits.shape
    assert bool(jnp.all(jnp.isfinite(logits)))
    print("KERNEL_OK")
</pallas_src>

<mosaic_0001>
module attributes {stable_mosaic.version = 11 : i64} {
  func.func @_mm_kernel(%arg0: i32, %arg1: i32, %arg2: i32, %arg3: i32, %arg4: memref<1x512x128xbf16, #tpu.memory_space<vmem>>, %arg5: memref<128x128xbf16, #tpu.memory_space<vmem>>, %arg6: memref<1x128xf32, #tpu.memory_space<vmem>>, %arg7: memref<1x128xf32, #tpu.memory_space<vmem>>, %arg8: memref<1x512x128xbf16, #tpu.memory_space<vmem>>, %arg9: memref<512x128xf32, #tpu.memory_space<vmem>>) attributes {dimension_semantics = [#tpu.dimension_semantics<parallel>, #tpu.dimension_semantics<parallel>, #tpu.dimension_semantics<parallel>, #tpu.dimension_semantics<arbitrary>], iteration_bounds = array<i64: 1, 4, 1, 1>, scalar_prefetch = 0 : i64, scratch_operands = 1 : i64, tpu.core_type = #tpu.core_type<tc>, window_params = [{transform_indices = @transform_0, window_bounds = array<i64: 1, 512, 128>}, {transform_indices = @transform_1, window_bounds = array<i64: 128, 128>}, {transform_indices = @transform_2, window_bounds = array<i64: 1, 128>}, {transform_indices = @transform_3, window_bounds = array<i64: 1, 128>}, {transform_indices = @transform_4, window_bounds = array<i64: 1, 512, 128>}]} {
    %c0_i32 = arith.constant 0 : i32
    %0 = arith.cmpi eq, %arg3, %c0_i32 : i32
    %1 = arith.extui %0 : i1 to i32
    %c0_i32_0 = arith.constant 0 : i32
    %2 = arith.cmpi ne, %1, %c0_i32_0 : i32
    scf.if %2 {
      %cst_11 = arith.constant 0.000000e+00 : f32
      %13 = vector.broadcast %cst_11 : f32 to vector<512x128xf32>
      %c0_12 = arith.constant 0 : index
      %c0_13 = arith.constant 0 : index
      %14 = vector.load %arg9[%c0_12, %c0_13] : memref<512x128xf32, #tpu.memory_space<vmem>>, vector<512x128xf32>
      tpu.vector_store %arg9[%c0_12, %c0_13], %13 {strides = array<i32>} : memref<512x128xf32, #tpu.memory_space<vmem>>, vector<512x128xf32>,
    } else {
    }
    %c0 = arith.constant 0 : index
    %c0_1 = arith.constant 0 : index
    %c0_2 = arith.constant 0 : index
    %3 = vector.load %arg4[%c0, %c0_1, %c0_2] : memref<1x512x128xbf16, #tpu.memory_space<vmem>>, vector<1x512x128xbf16>
    %4 = vector.shape_cast %3 : vector<1x512x128xbf16> to vector<512x128xbf16>
    %c0_3 = arith.constant 0 : index
    %c0_4 = arith.constant 0 : index
    %5 = vector.load %arg9[%c0_3, %c0_4] : memref<512x128xf32, #tpu.memory_space<vmem>>, vector<512x128xf32>
    %c0_5 = arith.constant 0 : index
    %c0_6 = arith.constant 0 : index
    %6 = vector.load %arg5[%c0_5, %c0_6] : memref<128x128xbf16, #tpu.memory_space<vmem>>, vector<128x128xbf16>
    %cst = arith.constant dense<0.000000e+00> : vector<512x128xf32>
    %7 = tpu.matmul %4, %6, %cst {dimension_numbers = #tpu.dot_dimension_numbers<[1], [0], [0], [1], [0, 0, 1, 1], [], []>} : vector<512x128xbf16>, vector<128x128xbf16>, vector<512x128xf32> -> vector<512x128xf32>
    %8 = arith.addf %5, %7 : vector<512x128xf32>
    %c0_7 = arith.constant 0 : index
    %c0_8 = arith.constant 0 : index
    %9 = vector.load %arg9[%c0_7, %c0_8] : memref<512x128xf32, #tpu.memory_space<vmem>>, vector<512x128xf32>
    tpu.vector_store %arg9[%c0_7, %c0_8], %8 {strides = array<i32>} : memref<512x128xf32, #tpu.memory_space<vmem>>, vector<512x128xf32>,
    %c0_i32_9 = arith.constant 0 : i32
    %10 = arith.cmpi eq, %arg3, %c0_i32_9 : i32
    %11 = arith.extui %10 : i1 to i32
    %c0_i32_10 = arith.constant 0 : i32
    %12 = arith.cmpi ne, %11, %c0_i32_10 : i32
    scf.if %12 {
      %c0_11 = arith.constant 0 : index
      %c0_12 = arith.constant 0 : index
      %13 = vector.load %arg9[%c0_11, %c0_12] : memref<512x128xf32, #tpu.memory_space<vmem>>, vector<512x128xf32>
      %c0_13 = arith.constant 0 : index
      %c0_14 = arith.constant 0 : index
      %14 = vector.load %arg6[%c0_13, %c0_14] : memref<1x128xf32, #tpu.memory_space<vmem>>, vector<1x128xf32>
      %15 = vector.broadcast %14 : vector<1x128xf32> to vector<512x128xf32>
      %16 = arith.mulf %13, %15 : vector<512x128xf32>
      %c0_15 = arith.constant 0 : index
      %c0_16 = arith.constant 0 : index
      %17 = vector.load %arg7[%c0_15, %c0_16] : memref<1x128xf32, #tpu.memory_space<vmem>>, vector<1x128xf32>
      %18 = vector.broadcast %17 : vector<1x128xf32> to vector<512x128xf32>
      %19 = arith.addf %16, %18 : vector<512x128xf32>
      %20 = arith.negf %19 : vector<512x128xf32>
      %21 = math.exp %20 : vector<512x128xf32>
      %cst_17 = arith.constant 1.000000e+00 : f32
      %22 = vector.broadcast %cst_17 : f32 to vector<512x128xf32>
      %23 = arith.addf %22, %21 : vector<512x128xf32>
      %24 = arith.divf %22, %23 : vector<512x128xf32>
      %25 = arith.mulf %19, %24 : vector<512x128xf32>
      %26 = arith.truncf %25 : vector<512x128xf32> to vector<512x128xbf16>
      %c0_18 = arith.constant 0 : index
      %c0_19 = arith.constant 0 : index
      %c0_20 = arith.constant 0 : index
      %27 = vector.load %arg8[%c0_18, %c0_19, %c0_20] : memref<1x512x128xbf16, #tpu.memory_space<vmem>>, vector<1x512x128xbf16>
      %28 = vector.shape_cast %27 : vector<1x512x128xbf16> to vector<512x128xbf16>
      %29 = vector.shape_cast %26 : vector<512x128xbf16> to vector<1x512x128xbf16>
      tpu.vector_store %arg8[%c0_18, %c0_19, %c0_20], %29 {strides = array<i32>} : memref<1x512x128xbf16, #tpu.memory_space<vmem>>, vector<1x512x128xbf16>,
    } else {
    }
    return
  }
  func.func @transform_0(%arg0: i32, %arg1: i32, %arg2: i32, %arg3: i32) -> (i32, i32, i32) {
    %c0_i32 = arith.constant 0 : i32
    return %arg0, %arg1, %arg3 : i32, i32, i32
  }
  func.func @transform_1(%arg0: i32, %arg1: i32, %arg2: i32, %arg3: i32) -> (i32, i32) {
    %c0_i32 = arith.constant 0 : i32
    return %arg3, %arg2 : i32, i32
  }
  func.func @transform_2(%arg0: i32, %arg1: i32, %arg2: i32, %arg3: i32) -> (i32, i32) {
    %c0_i32 = arith.constant 0 : i32
    %c0_i32_0 = arith.constant 0 : i32
    return %c0_i32, %arg2 : i32, i32
  }
  func.func @transform_3(%arg0: i32, %arg1: i32, %arg2: i32, %arg3: i32) -> (i32, i32) {
    %c0_i32 = arith.constant 0 : i32
    %c0_i32_0 = arith.constant 0 : i32
    return %c0_i32, %arg2 : i32, i32
  }
  func.func @transform_4(%arg0: i32, %arg1: i32, %arg2: i32, %arg3: i32) -> (i32, i32, i32) {
    %c0_i32 = arith.constant 0 : i32
    return %arg0, %arg1, %arg2 : i32, i32, i32
  }
}

</mosaic_0001>

<bundles_post_ra>
// kernel: stem_forward.1
= control target key start
LH: loop header
LB: loop body
LE: loop exit
PB: predicated region body
PF: predicated region fallthrough
CT: control target
= control target key end

     0   :  { %9 = vsyncpa [#allocation4], 0  ;;  %s4104_s0 = inlined_call_operand.vmem [shape: bf16[1,2048,128], index: 0, kind: input, shape index: {}]   ;;  %s4105_s1 = inlined_call_operand.vmem [shape: bf16[128,128], index: 1, kind: input, shape index: {}]   ;;  %s4106_s2 = inlined_call_operand.vmem [shape: f32[1,128], index: 2, kind: input, shape index: {}]   ;;  %s4107_s3 = inlined_call_operand.vmem [shape: f32[1,128], index: 3, kind: input, shape index: {}]   ;;  %s4108_s4 = inlined_call_operand.hbm [shape: bf16[1,2048,128], index: 4, kind: output, shape index: {}]  }
   0x1   :  { %11 = vsyncpa [#allocation4 + $0x1], 0  ;;  %s3351_s15 = smov 0   ;;  %s3353_s16 = smov 0  }
   0x2   :  { %s3355_s17 = smov 0   ;;  %s3357_s18 = smov 0  }
   0x3   :  { %s3359_s19 = smov 0   ;;  %s3361_s20 = smov 0  }
   0x4 LB: > { %s2310_s21 = sadd.s32 4294967295, %s3321_s20   ;;  %s2311_s22 = sadd.s32 4294967294, %s3321_s20   ;;  %s3321_s20 = sphi %s3361_s20, %s17_s20   ;;  %s3317_s19 = sphi %s3359_s19, %s4132_s19   ;;  %s3313_s18 = sphi %s3357_s18, %s4131_s18   ;;  %s3309_s17 = sphi %s3355_s17, %s4130_s17   ;;  %s3305_s16 = sphi %s3353_s16, %s4129_s16   ;;  %s3301_s15 = sphi %s3351_s15, %s4128_s15  }
   0x5   : > { %s39_s23 = sadd.s32 1, %s3317_s19  ;;  %s164_s24 = sadd.s32 1, %s3309_s17 }
   0x6   : > { %p41_p0 = scmp.ge.s32.totalorder %s39_s23, 4  ;;  %p174_p1 = scmp.ne.s32.totalorder %s3309_s17, %s3305_s16 }
   0x7   : > { %p175_p2 = scmp.eq.s32.totalorder %s2310_s21, 3  ;;  %p180_p3 = scmp.ne.s32.totalorder %s3305_s16, %s3301_s15 }
   0x8   : > { %s4134_s23 = smov (%p41_p0, %s39_s23), 0  ;;  %p181_p5 = scmp.eq.s32.totalorder %s2311_s22, 3 }
   0x9   : > { %p3391_p4 = por %p175_p2, %p174_p1  ;;  %s158_s26 = ssub.s32 %s3317_s19, %s4134_s23 }
   0xa   : > { %p2317_p6 = scmp.ge.s32.totalorder %s3321_s20, 1  ;;  %p162_p7 = scmp.eq.s32.totalorder %s158_s26, 0 }
   0xb   : > { %p3398_p8 = por %p181_p5, %p180_p3  ;;  %p239_p9 = scmp.lt.s32.totalorder %s3321_s20, 5 }
   0xc   : > { %s3404_s28 = scalar_select %p162_p7, %s3309_s17, %s164_s24  }
   0xd   : > { %p240_p10 = pnand %p2317_p6, %p239_p9 }
   0xf   : > { %243 = sbr.rel (%p240_p10) target bundleno = 433 (0x1b1), region = 36 }
  0x16   : > { %v2945_v0 = vld [vmem:[%s4105_s1] sm:$0xff]   ;;  %s2319_s5 = sshll.u32 %s3313_s18, 6  ;;  %v2946_v1 = vld [vmem:[%s4105_s1 + $0x8] sm:$0xff]   ;;  %v2947_v2 = vld [vmem:[%s4105_s1 + $0x10] sm:$0xff]   ;;  %s283_s12 = sand.u32 1, %s3305_s16  }
  0x17   : > { %p289_p11 = scmp.lt.s32.totalorder %s2319_s5, 255  ;;  %2792 = vmatprep.subr.bf16.mxu0 %v2945_v0  ;;  %2872 = vmatprep.subr.bf16.mxu1 %v2945_v0  ;;  %v2948_v3 = vld [vmem:[%s4105_s1 + $0x18] sm:$0xff]   ;;  %v2949_v6 = vld [vmem:[%s4105_s1 + $0x20] sm:$0xff]   ;;  %v2950_v7 = vld [vmem:[%s4105_s1 + $0x28] sm:$0xff]   ;;  %s2560_s29 = sshll.u32 %s3313_s18, 12 }
  0x18   : > { %2793 = vmatpush3.bf16.msra.mxu0 %v2945_v0  ;;  %2880 = vmatpush3.bf16.msra.mxu1 %v2945_v0  ;;  %v2951_v8 = vld [vmem:[%s4105_s1 + $0x30] sm:$0xff]   ;;  %v2952_v9 = vld [vmem:[%s4105_s1 + $0x38] sm:$0xff]   ;;  %v3471_v40 = vld [vmem:[%s4106_s2] ss:$0 sm:$0xff]  ;;  %s4049_s18 = scalar_lea.hbm %s4108_s4, %s2560_s29  ;;  %s4058_s7 = scalar_lea.sflag [#allocation4], %s283_s12 }
  0x19   : > { %s4136_s5 = smov (!%p289_p11, %s2319_s5), 255  ;;  %2794 = vmatprep.subr.bf16.mxu0 %v2946_v1  ;;  %2873 = vmatprep.subr.bf16.mxu1 %v2946_v1  ;;  %v3476_v42 = vld [vmem:[%s4107_s3] ss:$0 sm:$0xff]  ;;  %s3323_s9 = smov [#allocation3]  }
  0x1a   : > { %s2320_s10 = sshll.u32 %s4136_s5, 2 }
  0x1b   : > { %s3419_s13 = scalar_lea.vmem %s4104_s0, %s2320_s10  ;;  %s3247_s10 = sshll.u32 %s3323_s9, 4  ;;  %s3248_s10 = int_to_ptr.vmem [resolvable:$false] %s3247_s10 }
  0x1c   : > { %2795 = vmatpush3.bf16.msra.mxu0 %v2946_v1  ;;  %2881 = vmatpush3.bf16.msra.mxu1 %v2946_v1  ;;  %v2953_v4 = vld [vmem:[%s3419_s13] sm:$0xff]   ;;  %v2955_v10 = vld [vmem:[%s3419_s13 + $0x8] sm:$0xff]   ;;  %v2957_v12 = vld [vmem:[%s3419_s13 + $0x10] sm:$0xff]   ;;  %s3249_s11 = scalar_lea.vmem %s3248_s10, 8192 }
  0x1d   : > { %2796 = vmatprep.subr.bf16.mxu0 %v2947_v2  ;;  %2874 = vmatprep.subr.bf16.mxu1 %v2947_v2  ;;  %v2954_v5 = vld [vmem:[%s3419_s13 + $0x80] sm:$0xff]   ;;  %v2956_v11 = vld [vmem:[%s3419_s13 + $0x88] sm:$0xff]   ;;  %v2958_v13 = vld [vmem:[%s3419_s13 + $0x90] sm:$0xff]  }
  0x1e   : > { %2808 = vmatprep.mubr.bf16.mxu0 %v2953_v4  ;;  %2840 = vmatprep.mubr.bf16.mxu1 %v2954_v5  ;;  %v2959_v14 = vld [vmem:[%s3419_s13 + $0x18] sm:$0xff]   ;;  %v2961_v16 = vld [vmem:[%s3419_s13 + $0x20] sm:$0xff]   ;;  %v2963_v18 = vld [vmem:[%s3419_s13 + $0x28] sm:$0xff]  }
  0x1f   : > { %v2960_v15 = vld [vmem:[%s3419_s13 + $0x98] sm:$0xff]   ;;  %v2962_v17 = vld [vmem:[%s3419_s13 + $0xa0] sm:$0xff]   ;;  %v2964_v19 = vld [vmem:[%s3419_s13 + $0xa8] sm:$0xff]  }
  0x20   : > { %2797 = vmatpush3.bf16.msra.mxu0 %v2947_v2  ;;  %2882 = vmatpush3.bf16.msra.mxu1 %v2947_v2  ;;  %v2965_v20 = vld [vmem:[%s3419_s13 + $0x30] sm:$0xff]   ;;  %v2967_v22 = vld [vmem:[%s3419_s13 + $0x38] sm:$0xff]   ;;  %v2969_v24 = vld [vmem:[%s3419_s13 + $0x40] sm:$0xff]  }
  0x21   : > { %2798 = vmatprep.subr.bf16.mxu0 %v2948_v3  ;;  %2875 = vmatprep.subr.bf16.mxu1 %v2948_v3  ;;  %v2966_v21 = vld [vmem:[%s3419_s13 + $0xb0] sm:$0xff]   ;;  %v2968_v23 = vld [vmem:[%s3419_s13 + $0xb8] sm:$0xff]   ;;  %v2970_v25 = vld [vmem:[%s3419_s13 + $0xc0] sm:$0xff]  }
  0x22   : > { %v2971_v26 = vld [vmem:[%s3419_s13 + $0x48] sm:$0xff]   ;;  %v2973_v28 = vld [vmem:[%s3419_s13 + $0x50] sm:$0xff]   ;;  %v2975_v30 = vld [vmem:[%s3419_s13 + $0x58] sm:$0xff]  }
  0x23   : > { %v2972_v27 = vld [vmem:[%s3419_s13 + $0xc8] sm:$0xff]   ;;  %v2974_v29 = vld [vmem:[%s3419_s13 + $0xd0] sm:$0xff]   ;;  %v2976_v31 = vld [vmem:[%s3419_s13 + $0xd8] sm:$0xff]  }
  0x24   : > { %2799 = vmatpush3.bf16.msra.mxu0 %v2948_v3  ;;  %2883 = vmatpush3.bf16.msra.mxu1 %v2948_v3  ;;  %v2977_v32 = vld [vmem:[%s3419_s13 + $0x60] sm:$0xff]   ;;  %v2979_v34 = vld [vmem:[%s3419_s13 + $0x68] sm:$0xff]   ;;  %v2981_v36 = vld [vmem:[%s3419_s13 + $0x70] sm:$0xff]  }
  0x25   : > { %2800 = vmatprep.subr.bf16.mxu0 %v2949_v6  ;;  %2876 = vmatprep.subr.bf16.mxu1 %v2949_v6  ;;  %v2978_v33 = vld [vmem:[%s3419_s13 + $0xe0] sm:$0xff]   ;;  %v2980_v35 = vld [vmem:[%s3419_s13 + $0xe8] sm:$0xff]   ;;  %v2982_v37 = vld [vmem:[%s3419_s13 + $0xf0] sm:$0xff]  }
  0x26   : > { %v2983_v38 = vld [vmem:[%s3419_s13 + $0x78] sm:$0xff]  }
  0x27   : > { %v2984_v39 = vld [vmem:[%s3419_s13 + $0xf8] sm:$0xff]   ;;  %s3605_s13 = sshll.u32 %s283_s12, 8 }
  0x28   : > { %2801 = vmatpush3.bf16.msra.mxu0 %v2949_v6  ;;  %2884 = vmatpush3.bf16.msra.mxu1 %v2949_v6  ;;  %s3649_s14 = scalar_lea.vmem [#allocation3], %s3605_s13 }
  0x29   : > { %2802 = vmatprep.subr.bf16.mxu0 %v2950_v7  ;;  %2877 = vmatprep.subr.bf16.mxu1 %v2950_v7  ;;  %s2179_s30 = sshll.u32 %s3649_s14, 4  ;;  %s4051_s30 = int_to_ptr.vmem [resolvable:$true] %s2179_s30 }
  0x2a   : > { %s3243_s8 = scalar_lea.vmem %s4051_s30, 4096  ;;  %p3250_p1 = scmp.lt.s32.totalorder %s4051_s30, %s3248_s10 }
  0x2b   : > { %p3244_p12 = scmp.ne.s32.totalorder %s4051_s30, %s3243_s8  ;;  %p3251_p2 = scmp.lt.s32.totalorder %s3249_s11, %s3243_s8 }
  0x2c   : > { %2803 = vmatpush3.bf16.msra.mxu0 %v2950_v7  ;;  %2885 = vmatpush3.bf16.msra.mxu1 %v2950_v7 }
  0x2d   : > { %2804 = vmatprep.subr.bf16.mxu0 %v2951_v8  ;;  %2878 = vmatprep.subr.bf16.mxu1 %v2951_v8  ;;  %p3245_p13 = pnand %p3244_p12, %p3391_p4  ;;  %p3252_p3 = por %p3251_p2, %p3250_p1 }
  0x2f   : > { %p3246_p0 = pneg %p3245_p13 }
  0x30   : > { %2805 = vmatpush3.bf16.msra.mxu0 %v2951_v8  ;;  %2886 = vmatpush3.bf16.msra.mxu1 %v2951_v8 }
  0x31   : > { %2806 = vmatprep.subr.bf16.mxu0 %v2952_v9  ;;  %2879 = vmatprep.subr.bf16.mxu1 %v2952_v9  ;;  %p3253_p5 = pnand %p3252_p3, %p3246_p0 }
  0x34   : > { %2807 = vmatpush3.bf16.msra.mxu0 %v2952_v9  ;;  %2887 = vmatpush3.bf16.msra.mxu1 %v2952_v9 }
  0x37   : > { %2809 = vmatmul.mubr.bf16.vlgmr.msra.gmra.mrb[0].mxu0 %v2955_v10  ;;  %2841 = vmatmul.mubr.bf16.vlgmr.msra.gmra.mrb[0].mxu1 %v2956_v11 }
  0x38   : > { %2812 = vmatprep.mubr.bf16.mxu0 %v2957_v12  ;;  %2844 = vmatprep.mubr.bf16.mxu1 %v2958_v13 }
  0x3f   : > { %2813 = vmatmul.mubr.bf16.gmra.mrb[4].mxu0 %v2959_v14  ;;  %2845 = vmatmul.mubr.bf16.gmra.mrb[4].mxu1 %v2960_v15 }
  0x40   : > { %2816 = vmatprep.mubr.bf16.mxu0 %v2961_v16  ;;  %2848 = vmatprep.mubr.bf16.mxu1 %v2962_v17 }
  0x47   : > { %2817 = vmatmul.mubr.bf16.gmra.mrb[8].mxu0 %v2963_v18  ;;  %2849 = vmatmul.mubr.bf16.gmra.mrb[8].mxu1 %v2964_v19 }
  0x48   : > { %2820 = vmatprep.mubr.bf16.mxu0 %v2965_v20  ;;  %2852 = vmatprep.mubr.bf16.mxu1 %v2966_v21 }
  0x4f   : > { %2821 = vmatmul.mubr.bf16.gmra.mrb[12].mxu0 %v2967_v22  ;;  %2853 = vmatmul.mubr.bf16.gmra.mrb[12].mxu1 %v2968_v23 }
  0x50   : > { %2824 = vmatprep.mubr.bf16.mxu0 %v2969_v24  ;;  %2856 = vmatprep.mubr.bf16.mxu1 %v2970_v25 }
  0x57   : > { %2825 = vmatmul.mubr.bf16.gmra.mrb[16].mxu0 %v2971_v26  ;;  %2857 = vmatmul.mubr.bf16.gmra.mrb[16].mxu1 %v2972_v27 }
  0x58   : > { %2828 = vmatprep.mubr.bf16.mxu0 %v2973_v28  ;;  %2860 = vmatprep.mubr.bf16.mxu1 %v2974_v29 }
  0x5f   : > { %2829 = vmatmul.mubr.bf16.gmra.mrb[20].mxu0 %v2975_v30  ;;  %2861 = vmatmul.mubr.bf16.gmra.mrb[20].mxu1 %v2976_v31 }
  0x60   : > { %2832 = vmatprep.mubr.bf16.mxu0 %v2977_v32  ;;  %2864 = vmatprep.mubr.bf16.mxu1 %v2978_v33 }
  0x67   : > { %2833 = vmatmul.mubr.bf16.gmra.mrb[24].mxu0 %v2979_v34  ;;  %2865 = vmatmul.mubr.bf16.gmra.mrb[24].mxu1 %v2980_v35 }
  0x68   : > { %2836 = vmatprep.mubr.bf16.mxu0 %v2981_v36  ;;  %2868 = vmatprep.mubr.bf16.mxu1 %v2982_v37 }
  0x6f   : > { %2837 = vmatmul.mubr.bf16.gmra.mrb[28].mxu0 %v2983_v38  ;;  %2869 = vmatmul.mubr.bf16.gmra.mrb[28].mxu1 %v2984_v39 }
 0x10a   : > { %v2810_v41 = vpop.f32.mrb[0].mxu0  ;;  %v2842_v43 = vpop.f32.mrb[0].mxu1 }
 0x10b   : > { %v1261_v44 = vmul.f32 %v2810_v41, %v3471_v40  ;;  %v1293_v45 = vmul.f32 %v2842_v43, %v3471_v40  ;;  %v802_v46 = vpop.f32.mrb[1].mxu0  ;;  %v930_v47 = vpop.f32.mrb[1].mxu1 }
 0x10c   : > { %v1259_v48 = vmul.f32 %v3471_v40, %v802_v46  ;;  %v1291_v49 = vmul.f32 %v3471_v40, %v930_v47  ;;  %v2811_v50 = vpop.f32.mrb[2].mxu0  ;;  %v2843_v51 = vpop.f32.mrb[2].mxu1 }
 0x10d   : > { %v3483_v52 = vadd.f32 %v3476_v42, %v1261_v44  ;;  %v3486_v53 = vadd.f32 %v3476_v42, %v1293_v45  ;;  %v1262_v54 = vmul.f32 %v2811_v50, %v3471_v40  ;;  %v1294_v55 = vmul.f32 %v2843_v51, %v3471_v40  ;;  %v805_v56 = vpop.f32.mrb[3].mxu0  ;;  %v933_v57 = vpop.f32.mrb[3].mxu1 }
 0x10e   : > { %v3491_v58 = vadd.f32 %v3476_v42, %v1259_v48  ;;  %v3494_v59 = vadd.f32 %v3476_v42, %v1291_v49  ;;  %v1260_v60 = vmul.f32 %v3471_v40, %v805_v56  ;;  %v1292_v61 = vmul.f32 %v3471_v40, %v933_v57 }
 0x10f   : > { %v2365_v62 = vmul.f32 -1.442695, %v3483_v52  ;;  %v2397_v63 = vmul.f32 -1.442695, %v3486_v53  ;;  %v3501_v0 = vadd.f32 %v3476_v42, %v1262_v54  ;;  %v3504_v1 = vadd.f32 %v3476_v42, %v1294_v55 }
 0x110   : > { %v2363_v2 = vmul.f32 -1.442695, %v3491_v58  ;;  %v2395_v3 = vmul.f32 -1.442695, %v3494_v59  ;;  %v3509_v4 = vadd.f32 %v3476_v42, %v1260_v60  ;;  %v3512_v5 = vadd.f32 %v3476_v42, %v1292_v61 }
 0x111   : > { %2985 = vpow2.f32 %v2365_v62  ;;  %v2366_v6 = vmul.f32 -1.442695, %v3501_v0  ;;  %v2398_v7 = vmul.f32 -1.442695, %v3504_v1 }
 0x112   : > { %2987 = vpow2.f32 %v2397_v63  ;;  %v2814_v8 = vpop.f32.mrb[4].mxu0  ;;  %v2846_v9 = vpop.f32.mrb[4].mxu1  ;;  %v2364_v10 = vmul.f32 -1.442695, %v3509_v4  ;;  %v2396_v15 = vmul.f32 -1.442695, %v3512_v5 }
 0x113   : > { %2989 = vpow2.f32 %v2363_v2  ;;  %v1265_v11 = vmul.f32 %v2814_v8, %v3471_v40  ;;  %v1297_v12 = vmul.f32 %v2846_v9, %v3471_v40  ;;  %v818_v13 = vpop.f32.mrb[5].mxu0  ;;  %v946_v14 = vpop.f32.mrb[5].mxu1 }
 0x114   : > { %2991 = vpow2.f32 %v2395_v3  ;;  %v1263_v16 = vmul.f32 %v3471_v40, %v818_v13  ;;  %v1295_v17 = vmul.f32 %v3471_v40, %v946_v14  ;;  %v2815_v18 = vpop.f32.mrb[6].mxu0  ;;  %v2847_v19 = vpop.f32.mrb[6].mxu1 }
 0x115   : > { %2993 = vpow2.f32 %v2366_v6  ;;  %v3523_v20 = vadd.f32 %v3476_v42, %v1265_v11  ;;  %v3526_v21 = vadd.f32 %v3476_v42, %v1297_v12  ;;  %v1266_v22 = vmul.f32 %v2815_v18, %v3471_v40  ;;  %v821_v23 = vpop.f32.mrb[7].mxu0  ;;  %v949_v24 = vpop.f32.mrb[7].mxu1 }
 0x116   : > { %2995 = vpow2.f32 %v2398_v7  ;;  %v3530_v25 = vadd.f32 %v3476_v42, %v1263_v16  ;;  %v3533_v26 = vadd.f32 %v3476_v42, %v1295_v17  ;;  %v1298_v27 = vmul.f32 %v2847_v19, %v3471_v40 }
 0x117   : > { %2997 = vpow2.f32 %v2364_v10  ;;  %v2369_v28 = vmul.f32 -1.442695, %v3523_v20  ;;  %v2401_v29 = vmul.f32 -1.442695, %v3526_v21  ;;  %v3539_v30 = vadd.f32 %v3476_v42, %v1266_v22 }
 0x118   : > { %2999 = vpow2.f32 %v2396_v15  ;;  %v2367_v31 = vmul.f32 -1.442695, %v3530_v25  ;;  %v2399_v32 = vmul.f32 -1.442695, %v3533_v26  ;;  %v1264_v34 = vmul.f32 %v3471_v40, %v821_v23 }
 0x119   : > { %3001 = vpow2.f32 %v2369_v28  ;;  %v2370_v33 = vmul.f32 -1.442695, %v3539_v30  ;;  %v3546_v38 = vadd.f32 %v3476_v42, %v1298_v27  ;;  %v1296_v45 = vmul.f32 %v3471_v40, %v949_v24 }
 0x11a   : > { %3003 = vpow2.f32 %v2401_v29  ;;  %v2818_v35 = vpop.f32.mrb[8].mxu0  ;;  %v2850_v36 = vpop.f32.mrb[8].mxu1  ;;  %v3550_v55 = vadd.f32 %v3476_v42, %v1264_v34 }
 0x11b   : > { %v2986_v37 = vpop.eup %2985  ;;  %3005 = vpow2.f32 %v2367_v31  ;;  %v834_v39 = vpop.f32.mrb[9].mxu0  ;;  %v3553_v61 = vmul.f32 -1.442695, %v3546_v38  ;;  %v3556_v2 = vadd.f32 %v3476_v42, %v1296_v45  ;;  %v1269_v3 = vmul.f32 %v2818_v35, %v3471_v40 }
 0x11c   : > { %v962_v41 = vpop.f32.mrb[9].mxu1  ;;  %v2988_v43 = vpop.eup %2987  ;;  %v1588_v44 = vadd.f32 1.0, %v2986_v37  ;;  %3007 = vpow2.f32 %v2399_v32  ;;  %v1301_v8 = vmul.f32 %v2850_v36, %v3471_v40  ;;  %v1267_v9 = vmul.f32 %v3471_v40, %v834_v39 }
 0x11d   : > { %v2819_v46 = vpop.f32.mrb[10].mxu0  ;;  %v2851_v47 = vpop.f32.mrb[10].mxu1  ;;  %v1620_v49 = vadd.f32 1.0, %v2988_v43  ;;  %3009 = vpow2.f32 %v2370_v33  ;;  %v2368_v12 = vmul.f32 -1.442695, %v3550_v55  ;;  %v1299_v13 = vmul.f32 %v3471_v40, %v962_v41 }
 0x11e   : > { %v2990_v48 = vpop.eup %2989  ;;  %v837_v50 = vpop.f32.mrb[11].mxu0  ;;  %3011 = vrcp.f32 %v1588_v44  ;;  %v1270_v18 = vmul.f32 %v2819_v46, %v3471_v40  ;;  %v1302_v19 = vmul.f32 %v2851_v47, %v3471_v40  ;;  %v3568_v28 = vadd.f32 %v3476_v42, %v1269_v3 }
 0x11f   : > { %v2992_v51 = vpop.eup %2991  ;;  %v1586_v54 = vadd.f32 1.0, %v2990_v48  ;;  %v965_v56 = vpop.f32.mrb[11].mxu1  ;;  %3013 = vrcp.f32 %v1620_v49  ;;  %v1268_v29 = vmul.f32 %v3471_v40, %v837_v50  ;;  %v3576_v35 = vadd.f32 %v3476_v42, %v1301_v8 }
 0x120   : > { %v2994_v57 = vpop.eup %2993  ;;  %v1618_v60 = vadd.f32 1.0, %v2992_v51  ;;  %v3579_v36 = vadd.f32 %v3476_v42, %v1267_v9  ;;  %v2400_v44 = vmul.f32 -1.442695, %v3556_v2  ;;  %v3587_v45 = vadd.f32 %v3476_v42, %v1299_v13 }
 0x121   : > { %v2996_v62 = vpop.eup %2995  ;;  %3015 = vrcp.f32 %v1586_v54  ;;  %v1589_v63 = vadd.f32 1.0, %v2994_v57  ;;  %v3591_v48 = vadd.f32 %v3476_v42, %v1270_v18  ;;  %v3594_v49 = vadd.f32 %v3476_v42, %v1302_v19 }
 0x122   : > { %v2998_v6 = vpop.eup %2997  ;;  %3017 = vrcp.f32 %v1618_v60  ;;  %v1621_v7 = vadd.f32 1.0, %v2996_v62  ;;  %v2822_v14 = vpop.f32.mrb[12].mxu0  ;;  %v3597_v54 = vadd.f32 %v3476_v42, %v1268_v29  ;;  %v1300_v57 = vmul.f32 %v3471_v40, %v965_v56 }
 0x123   : > { %v3000_v10 = vpop.eup %2999  ;;  %3019 = vrcp.f32 %v1589_v63  ;;  %v1587_v11 = vadd.f32 1.0, %v2998_v6  ;;  %v2854_v15 = vpop.f32.mrb[12].mxu1  ;;  %v2373_v62 = vmul.f32 -1.442695, %v3568_v28  ;;  %v2405_v63 = vmul.f32 -1.442695, %v3576_v35 }
 0x124   : > { %v3002_v16 = vpop.eup %3001  ;;  %3021 = vrcp.f32 %v1621_v7  ;;  %v1619_v17 = vadd.f32 1.0, %v3000_v10  ;;  %v850_v22 = vpop.f32.mrb[13].mxu0  ;;  %v2371_v3 = vmul.f32 -1.442695, %v3579_v36  ;;  %v2403_v7 = vmul.f32 -1.442695, %v3587_v45 }
 0x125   : > { %v3565_v23 = vpop.f32.mrb[13].mxu1  ;;  %v3004_v24 = vpop.eup %3003  ;;  %3023 = vrcp.f32 %v1587_v11  ;;  %v1592_v27 = vadd.f32 1.0, %v3002_v16  ;;  %v1273_v8 = vmul.f32 %v2822_v14, %v3471_v40  ;;  %v1305_v9 = vmul.f32 %v2854_v15, %v3471_v40 }
 0x126   : > { %v3571_v31 = vpop.f32.mrb[14].mxu0  ;;  %v3573_v32 = vpop.f32.mrb[14].mxu1  ;;  %3025 = vrcp.f32 %v1619_v17  ;;  %v1624_v34 = vadd.f32 1.0, %v3004_v24  ;;  %v2374_v13 = vmul.f32 -1.442695, %v3591_v48  ;;  %v3624_v24 = vadd.f32 %v3476_v42, %v1300_v57 }
 0x127   : > { %v3006_v33 = vpop.eup %3005  ;;  %v3581_v37 = vpop.f32.mrb[15].mxu0  ;;  %3027 = vrcp.f32 %v1592_v27  ;;  %v2406_v16 = vmul.f32 -1.442695, %v3594_v49  ;;  %v2372_v15 = vmul.f32 -1.442695, %v3597_v54 }
 0x128   : > { %v3583_v39 = vpop.f32.mrb[15].mxu1  ;;  %v3008_v41 = vpop.eup %3007  ;;  %v1590_v43 = vadd.f32 1.0, %v3006_v33  ;;  %3029 = vrcp.f32 %v1624_v34 }
 0x129   : > { %v3010_v46 = vpop.eup %3009  ;;  %v1622_v47 = vadd.f32 1.0, %v3008_v41  ;;  %v1271_v41 = vmul.f32 %v3471_v40, %v850_v22 }
 0x12a   : > { %v3012_v50 = vpop.eup %3011  ;;  %3031 = vrcp.f32 %v1590_v43  ;;  %v1593_v51 = vadd.f32 1.0, %v3010_v46  ;;  %v3610_v56 = vpop.f32.mrb[16].mxu0 }
 0x12b   : > { %v3014_v60 = vpop.eup %3013  ;;  %3033 = vrcp.f32 %v1622_v47  ;;  %v3612_v10 = vpop.f32.mrb[16].mxu1  ;;  %v1780_v14 = vmul.f32 %v3012_v50, %v3483_v52  ;;  %v3639_v47 = vadd.f32 %v3476_v42, %v1273_v8  ;;  %v3642_v50 = vadd.f32 %v3476_v42, %v1305_v9 }
 0x12c   : > { %v3016_v6 = vpop.eup %3015  ;;  %3035 = vrcp.f32 %v1593_v51  ;;  %v3617_v17 = vpop.f32.mrb[17].mxu0  ;;  %v1812_v33 = vmul.f32 %v3014_v60, %v3486_v53 }
 0x12d   : > { %v3018_v11 = vpop.eup %3017  ;;  %3037 = vpow2.f32 %v3553_v61  ;;  %v3619_v18 = vpop.f32.mrb[17].mxu1 }
 0x12e   : > { %v3020_v19 = vpop.eup %3019  ;;  %3039 = vpow2.f32 %v2368_v12  ;;  %v3626_v27 = vpop.f32.mrb[18].mxu0  ;;  %v1810_v57 = vmul.f32 %v3018_v11, %v3494_v59  ;;  %v2377_v59 = vmul.f32 -1.442695, %v3639_v47 }
 0x12f   : > { %v3628_v61 = vpop.f32.mrb[18].mxu1  ;;  %v3022_v29 = vpop.eup %3021  ;;  %v1781_v34 = vmul.f32 %v3020_v19, %v3501_v0  ;;  %3041 = vpow2.f32 %v2400_v44  ;;  %v1778_v0 = vmul.f32 %v3016_v6, %v3491_v58  ;;  %v2404_v58 = vmul.f32 -1.442695, %v3624_v24 }
 0x130   : > { %v3633_v43 = vpop.f32.mrb[19].mxu0  ;;  %v3635_v52 = vpop.f32.mrb[19].mxu1  ;;  %v1813_v46 = vmul.f32 %v3022_v29, %v3504_v1  ;;  %3043 = vpow2.f32 %v2373_v62 }
 0x131   : > { %v3024_v12 = vpop.eup %3023  ;;  %v2569_v44 = vpack.c.bf16 %v1781_v34, %v1780_v14  ;;  %3045 = vpow2.f32 %v2405_v63  ;;  %v3671_v14 = vadd.f32 %v3476_v42, %v1271_v41 }
 0x132   : > { %v3026_v53 = vpop.eup %3025  ;;  %v1779_v22 = vmul.f32 %v3024_v12, %v3509_v4  ;;  %v2649_v60 = vpack.c.bf16 %v1813_v46, %v1812_v33  ;;  %3047 = vpow2.f32 %v2371_v3  ;;  %v3657_v3 = vpop.f32.mrb[20].mxu0  ;;  %v1306_v46 = vmul.f32 %v3573_v32, %v3471_v40 }
 0x133   : > { %v3028_v51 = vpop.eup %3027  ;;  %v1811_v1 = vmul.f32 %v3026_v53, %v3512_v5  ;;  %2721 = vst [vmem:[%s3649_s14 + $0x8] sm:$0xff] %v2569_v44   ;;  %3049 = vpow2.f32 %v2403_v7  ;;  %v1303_v5 = vmul.f32 %v3471_v40, %v3565_v23  ;;  %v3659_v6 = vpop.f32.mrb[20].mxu1  ;;  %v2409_v7 = vmul.f32 -1.442695, %v3642_v50 }
 0x134   : > { %v3030_v62 = vpop.eup %3029  ;;  %v2564_v8 = vpack.c.bf16 %v1779_v22, %v1778_v0  ;;  %2737 = vst [vmem:[%s3649_s14 + $0x88] sm:$0xff] %v2649_v60   ;;  %3051 = vpow2.f32 %v2374_v13  ;;  %v3665_v11 = vpop.f32.mrb[21].mxu0  ;;  %v1274_v23 = vmul.f32 %v3571_v31, %v3471_v40  ;;  %v1784_v34 = vmul.f32 %v3028_v51, %v3523_v20 }
 0x135   : > { %v3032_v4 = vpop.eup %3031  ;;  %v2644_v63 = vpack.c.bf16 %v1811_v1, %v1810_v57  ;;  %3053 = vpow2.f32 %v2406_v16  ;;  %v3667_v19 = vpop.f32.mrb[21].mxu1  ;;  %v3688_v0 = vadd.f32 %v3476_v42, %v1303_v5  ;;  %v3695_v1 = vmul.f32 -1.442695, %v3671_v14 }
 0x136   : > { %v3661_v9 = vpop.eup %3033  ;;  %2565 = vst [vmem:[%s3649_s14] sm:$0xff] %v2564_v8   ;;  %3055 = vpow2.f32 %v2372_v15  ;;  %v3675_v29 = vpop.f32.mrb[22].mxu0  ;;  %v3691_v32 = vadd.f32 %v3476_v42, %v1274_v23  ;;  %v3698_v8 = vadd.f32 %v3476_v42, %v1306_v46  ;;  %v1272_v5 = vmul.f32 %v3471_v40, %v3581_v37 }
 0x137   : > { %v3036_v13 = vpop.eup %3035  ;;  %2736 = vst [vmem:[%s3649_s14 + $0x80] sm:$0xff] %v2644_v63   ;;  %v3677_v33 = vpop.f32.mrb[22].mxu1  ;;  %3057 = vpow2.f32 %v2404_v58  ;;  %v3719_v37 = vmul.f32 %v3032_v4, %v3530_v25 }
 0x138   : > { %v3038_v16 = vpop.eup %3037  ;;  %v1785_v12 = vmul.f32 %v3036_v13, %v3539_v30  ;;  %v3683_v15 = vpop.f32.mrb[23].mxu0  ;;  %3059 = vpow2.f32 %v2377_v59  ;;  %v3701_v59 = vmul.f32 -1.442695, %v3688_v0 }
 0x139   : > { %v3685_v41 = vpop.f32.mrb[23].mxu1  ;;  %v3040_v53 = vpop.eup %3039  ;;  %v1625_v31 = vadd.f32 1.0, %v3038_v16  ;;  %3061 = vpow2.f32 %v2409_v7  ;;  %v3710_v16 = vmul.f32 %v3030_v62, %v3526_v21 }
 0x13a   : > { %v3042_v44 = vpop.eup %3041  ;;  %v2579_v22 = vpack.c.bf16 %v1785_v12, %v1784_v34  ;;  %v1591_v20 = vadd.f32 1.0, %v3040_v53  ;;  %v3705_v7 = vpop.f32.mrb[24].mxu0  ;;  %v1304_v12 = vmul.f32 %v3471_v40, %v3583_v39 }
 0x13b   : > { %v3044_v30 = vpop.eup %3043  ;;  %3063 = vrcp.f32 %v1625_v31  ;;  %v1623_v51 = vadd.f32 1.0, %v3042_v44  ;;  %v3707_v13 = vpop.f32.mrb[24].mxu1 }
 0x13c   : > { %v3046_v57 = vpop.eup %3045  ;;  %2723 = vst [vmem:[%s3649_s14 + $0x18] sm:$0xff] %v2579_v22   ;;  %3065 = vrcp.f32 %v1591_v20  ;;  %v1596_v60 = vadd.f32 1.0, %v3044_v30  ;;  %v3714_v46 = vpop.f32.mrb[25].mxu0  ;;  %v3722_v22 = vmul.f32 -1.442695, %v3691_v32 }
 0x13d   : > { %v3048_v58 = vpop.eup %3047  ;;  %3067 = vrcp.f32 %v1623_v51  ;;  %v1628_v63 = vadd.f32 1.0, %v3046_v57  ;;  %v3716_v53 = vpop.f32.mrb[25].mxu1  ;;  %v3729_v30 = vmul.f32 -1.442695, %v3698_v8  ;;  %v1277_v51 = vmul.f32 %v3610_v56, %v3471_v40 }
 0x13e   : > { %v3050_v23 = vpop.eup %3049  ;;  %3069 = vrcp.f32 %v1596_v60  ;;  %v1594_v34 = vadd.f32 1.0, %v3048_v58  ;;  %v3724_v21 = vpop.f32.mrb[26].mxu0  ;;  %v3739_v60 = vmul.f32 %v3661_v9, %v3533_v26  ;;  %v1309_v56 = vmul.f32 %v3612_v10, %v3471_v40 }
 0x13f   : > { %v3052_v31 = vpop.eup %3051  ;;  %3071 = vrcp.f32 %v1628_v63  ;;  %v1626_v44 = vadd.f32 1.0, %v3050_v23  ;;  %v3726_v62 = vpop.f32.mrb[26].mxu1  ;;  %v3742_v63 = vadd.f32 %v3476_v42, %v1272_v5  ;;  %v1275_v26 = vmul.f32 %v3471_v40, %v3617_v17 }
 0x140   : > { %v3054_v20 = vpop.eup %3053  ;;  %3073 = vrcp.f32 %v1594_v34  ;;  %v1597_v39 = vadd.f32 1.0, %v3052_v31  ;;  %v3733_v25 = vpop.f32.mrb[27].mxu0  ;;  %v3745_v31 = vadd.f32 %v3476_v42, %v1304_v12  ;;  %v1307_v9 = vmul.f32 %v3471_v40, %v3619_v18 }
 0x141   : > { %4112 = vst [vmem:[#allocation6_spill] sm:$0xff] %v3733_v25  ;;  %v3735_v4 = vpop.f32.mrb[27].mxu1  ;;  %v3056_v57 = vpop.eup %3055  ;;  %3075 = vrcp.f32 %v1626_v44  ;;  %v1629_v58 = vadd.f32 1.0, %v3054_v20  ;;  %v3754_v20 = vadd.f32 %v3476_v42, %v1277_v51  ;;  %v1278_v12 = vmul.f32 %v3626_v27, %v3471_v40 }
 0x142   : > { %4113 = vst [vmem:[#allocation7_spill] sm:$0xff] %v3735_v4  ;;  %v3058_v23 = vpop.eup %3057  ;;  %3077 = vrcp.f32 %v1597_v39  ;;  %v1595_v34 = vadd.f32 1.0, %v3056_v57  ;;  %v2376_v57 = vmul.f32 -1.442695, %v3742_v63  ;;  %v1310_v17 = vmul.f32 %v3628_v61, %v3471_v40  ;;  %v3763_v18 = vpop.f32.mrb[28].mxu1 }
 0x143   : > { %v3060_v4 = vpop.eup %3059  ;;  %3079 = vrcp.f32 %v1629_v58  ;;  %v1627_v25 = vadd.f32 1.0, %v3058_v23  ;;  %v3761_v58 = vpop.f32.mrb[28].mxu0  ;;  %4114 = vst [vmem:[#allocation8_spill] sm:$0xff] %v3763_v18  ;;  %v3767_v51 = vadd.f32 %v3476_v42, %v1309_v56  ;;  %v1276_v27 = vmul.f32 %v3471_v40, %v3633_v43 }
 0x144   : > { %v3062_v5 = vpop.eup %3061  ;;  %3081 = vrcp.f32 %v1595_v34  ;;  %v1600_v44 = vadd.f32 1.0, %v3060_v4  ;;  %v3773_v34 = vpop.f32.mrb[29].mxu1  ;;  %v3777_v18 = vadd.f32 %v3476_v42, %v1275_v26 }
 0x145   : > { %v3064_v39 = vpop.eup %3063  ;;  %3083 = vrcp.f32 %v1627_v25  ;;  %v1632_v10 = vadd.f32 1.0, %v3062_v5  ;;  %v3771_v25 = vpop.f32.mrb[29].mxu0  ;;  %4115 = vst [vmem:[#allocation9_spill] sm:$0xff] %v3773_v34 }
 0x146   : > { %v3066_v23 = vpop.eup %3065  ;;  %v1817_v4 = vmul.f32 %v3064_v39, %v3546_v38  ;;  %3085 = vrcp.f32 %v1600_v44  ;;  %v3780_v38 = vadd.f32 %v3476_v42, %v1307_v9  ;;  %v3782_v56 = vpop.f32.mrb[30].mxu0 }
 0x147   : > { %v3068_v5 = vpop.eup %3067  ;;  %v1783_v61 = vmul.f32 %v3066_v23, %v3550_v55  ;;  %3087 = vrcp.f32 %v1632_v10  ;;  %v3784_v44 = vpop.f32.mrb[30].mxu1  ;;  %v3790_v55 = vadd.f32 %v3476_v42, %v1278_v12 }
 0x148   : > { %4116 = vst [vmem:[#allocation10_spill] sm:$0xff] %v3780_v38  ;;  %4117 = vst [vmem:[#allocation11_spill] sm:$0xff] %v3784_v44  ;;  %v3070_v43 = vpop.eup %3069  ;;  %v2659_v39 = vpack.c.bf16 %v1817_v4, %v3710_v16  ;;  %v1815_v34 = vmul.f32 %v3068_v5, %v3556_v2  ;;  %3089 = vpow2.f32 %v3695_v1  ;;  %v3792_v26 = vpop.f32.mrb[31].mxu0  ;;  %v2408_v16 = vmul.f32 -1.442695, %v3745_v31 }
 0x149   : > { %4118 = vst [vmem:[#allocation12_spill] sm:$0xff] %v3792_v26  ;;  %v3794_v9 = vpop.f32.mrb[31].mxu1  ;;  %v3072_v10 = vpop.eup %3071  ;;  %v2574_v23 = vpack.c.bf16 %v1783_v61, %v3719_v37  ;;  %3091 = vpow2.f32 %v3701_v59  ;;  %v3800_v2 = vadd.f32 %v3476_v42, %v1310_v17  ;;  %v2381_v4 = vmul.f32 -1.442695, %v3754_v20 }
 0x14a   : > { %4119 = vst [vmem:[#allocation13_spill] sm:$0xff] %v3794_v9  ;;  %v3074_v1 = vpop.eup %3073  ;;  %2739 = vst [vmem:[%s3649_s14 + $0x98] sm:$0xff] %v2659_v39   ;;  %v2654_v12 = vpack.c.bf16 %v1815_v34, %v3739_v60  ;;  %3093 = vpow2.f32 %v3722_v22  ;;  %v3807_v5 = vadd.f32 %v3476_v42, %v1276_v27  ;;  %v2413_v59 = vmul.f32 -1.442695, %v3767_v51 }
 0x14b   : > { %v3076_v9 = vpop.eup %3075  ;;  %2722 = vst [vmem:[%s3649_s14 + $0x10] sm:$0xff] %v2574_v23   ;;  %3095 = vpow2.f32 %v3729_v30  ;;  %v2379_v17 = vmul.f32 -1.442695, %v3777_v18  ;;  %v2411_v60 = vmul.f32 -1.442695, %v3780_v38  ;;  %v1788_v61 = vmul.f32 %v3070_v43, %v3568_v28 }
 0x14c   : > { %v3078_v37 = vpop.eup %3077  ;;  %2738 = vst [vmem:[%s3649_s14 + $0x90] sm:$0xff] %v2654_v12   ;;  %3097 = vpow2.f32 %v2376_v57  ;;  %v2382_v22 = vmul.f32 -1.442695, %v3790_v55  ;;  %v2414_v39 = vmul.f32 -1.442695, %v3800_v2  ;;  %v1820_v23 = vmul.f32 %v3072_v10, %v3576_v35 }
 0x14d   : > { %v3080_v34 = vpop.eup %3079  ;;  %v1789_v27 = vmul.f32 %v3078_v37, %v3591_v48  ;;  %3099 = vpow2.f32 %v2408_v16  ;;  %v2380_v12 = vmul.f32 -1.442695, %v3807_v5  ;;  %v1786_v26 = vmul.f32 %v3074_v1, %v3579_v36 }
 0x14e   : > { %v3082_v30 = vpop.eup %3081  ;;  %v1821_v57 = vmul.f32 %v3080_v34, %v3594_v49  ;;  %3101 = vpow2.f32 %v2381_v4  ;;  %v1818_v43 = vmul.f32 %v3076_v9, %v3587_v45  ;;  %v1308_v36 = vmul.f32 %v3471_v40, %v3635_v52 }
 0x14f   : > { %v3084_v38 = vpop.eup %3083  ;;  %v2589_v44 = vpack.c.bf16 %v1789_v27, %v1788_v61  ;;  %v1787_v28 = vmul.f32 %v3082_v30, %v3597_v54  ;;  %3103 = vpow2.f32 %v2413_v59  ;;  %v1281_v54 = vmul.f32 %v3657_v3, %v3471_v40 }
 0x150   : > { %v3824_v48 = vpop.eup %3085  ;;  %v2669_v16 = vpack.c.bf16 %v1821_v57, %v1820_v23  ;;  %v1819_v35 = vmul.f32 %v3084_v38, %v3624_v24  ;;  %3105 = vpow2.f32 %v2379_v17  ;;  %v1313_v38 = vmul.f32 %v3659_v6, %v3471_v40 }
 0x151   : > { %v3828_v49 = vpop.eup %3087  ;;  %2725 = vst [vmem:[%s3649_s14 + $0x28] sm:$0xff] %v2589_v44   ;;  %v2584_v10 = vpack.c.bf16 %v1787_v28, %v1786_v26  ;;  %3107 = vpow2.f32 %v2411_v60  ;;  %v1279_v44 = vmul.f32 %v3471_v40, %v3665_v11  ;;  %v3843_v59 = vadd.f32 %v3476_v42, %v1308_v36 }
 0x152   : > { %v3090_v1 = vpop.eup %3089  ;;  %2741 = vst [vmem:[%s3649_s14 + $0xa8] sm:$0xff] %v2669_v16   ;;  %v2664_v4 = vpack.c.bf16 %v1819_v35, %v1818_v43  ;;  %3109 = vpow2.f32 %v2382_v22  ;;  %v3846_v37 = vadd.f32 %v3476_v42, %v1281_v54  ;;  %v1311_v6 = vmul.f32 %v3471_v40, %v3667_v19 }
 0x153   : > { %v3092_v45 = vpop.eup %3091  ;;  %2724 = vst [vmem:[%s3649_s14 + $0x20] sm:$0xff] %v2584_v10   ;;  %v1598_v24 = vadd.f32 1.0, %v3090_v1  ;;  %3111 = vpow2.f32 %v2414_v39  ;;  %v3851_v34 = vadd.f32 %v3476_v42, %v1313_v38  ;;  %v3854_v61 = vadd.f32 %v3476_v42, %v1279_v44 }
 0x154   : > { %v3094_v26 = vpop.eup %3093  ;;  %2740 = vst [vmem:[%s3649_s14 + $0xa0] sm:$0xff] %v2664_v4   ;;  %v1630_v52 = vadd.f32 1.0, %v3092_v45  ;;  %3113 = vpow2.f32 %v2380_v12  ;;  %v1282_v30 = vmul.f32 %v3675_v29, %v3471_v40  ;;  %v1314_v23 = vmul.f32 %v3677_v33, %v3471_v40 }
 0x155   : > { %v3096_v9 = vpop.eup %3095  ;;  %3115 = vrcp.f32 %v1598_v24  ;;  %v1601_v3 = vadd.f32 1.0, %v3094_v26  ;;  %v2412_v12 = vmul.f32 -1.442695, %v3843_v59  ;;  %v2385_v28 = vmul.f32 -1.442695, %v3846_v37 }
 0x156   : > { %v3098_v17 = vpop.eup %3097  ;;  %3117 = vrcp.f32 %v1630_v52  ;;  %v1633_v60 = vadd.f32 1.0, %v3096_v9  ;;  %v3863_v35 = vadd.f32 %v3476_v42, %v1311_v6  ;;  %v1280_v10 = vmul.f32 %v3471_v40, %v3683_v15 }
 0x157   : > { %v3100_v11 = vpop.eup %3099  ;;  %3119 = vrcp.f32 %v1601_v3  ;;  %v1599_v22 = vadd.f32 1.0, %v3098_v17  ;;  %v2417_v33 = vmul.f32 -1.442695, %v3851_v34  ;;  %v2383_v54 = vmul.f32 -1.442695, %v3854_v61 }
 0x158   : > { %v3102_v27 = vpop.eup %3101  ;;  %3121 = vrcp.f32 %v1633_v60  ;;  %v1631_v39 = vadd.f32 1.0, %v3100_v11  ;;  %v3870_v45 = vadd.f32 %v3476_v42, %v1282_v30  ;;  %v3873_v24 = vadd.f32 %v3476_v42, %v1314_v23 }
 0x159   : > { %v3104_v57 = vpop.eup %3103  ;;  %3123 = vrcp.f32 %v1599_v22  ;;  %v1604_v19 = vadd.f32 1.0, %v3102_v27  ;;  %v1312_v15 = vmul.f32 %v3471_v40, %v3685_v41  ;;  %v1285_v26 = vmul.f32 %v3705_v7, %v3471_v40 }
 0x15a   : > { %v3106_v43 = vpop.eup %3105  ;;  %3125 = vrcp.f32 %v1631_v39  ;;  %v1636_v16 = vadd.f32 1.0, %v3104_v57  ;;  %v2415_v3 = vmul.f32 -1.442695, %v3863_v35  ;;  %v3881_v17 = vadd.f32 %v3476_v42, %v1280_v10 }
 0x15b   : > { %v3108_v29 = vpop.eup %3107  ;;  %3127 = vrcp.f32 %v1604_v19  ;;  %v1602_v36 = vadd.f32 1.0, %v3106_v43  ;;  %v1317_v11 = vmul.f32 %v3707_v13, %v3471_v40  ;;  %v1283_v41 = vmul.f32 %v3471_v40, %v3714_v46 }
 0x15c   : > { %v3110_v1 = vpop.eup %3109  ;;  %3129 = vrcp.f32 %v1636_v16  ;;  %v1634_v4 = vadd.f32 1.0, %v3108_v29  ;;  %v1792_v7 = vmul.f32 %v3824_v48, %v3639_v47  ;;  %v2386_v27 = vmul.f32 -1.442695, %v3870_v45 }
 0x15d   : > { %v3112_v38 = vpop.eup %3111  ;;  %3131 = vrcp.f32 %v1602_v36  ;;  %v1605_v44 = vadd.f32 1.0, %v3110_v1  ;;  %v2418_v39 = vmul.f32 -1.442695, %v3873_v24  ;;  %v1824_v23 = vmul.f32 %v3828_v49, %v3642_v50 }
 0x15e   : > { %v3114_v52 = vpop.eup %3113  ;;  %3133 = vrcp.f32 %v1634_v4  ;;  %v1637_v9 = vadd.f32 1.0, %v3112_v38  ;;  %v3894_v57 = vadd.f32 %v3476_v42, %v1312_v15  ;;  %v3897_v13 = vadd.f32 %v3476_v42, %v1285_v26 }
 0x15f   : > { %v3116_v60 = vpop.eup %3115  ;;  %3135 = vrcp.f32 %v1605_v44  ;;  %v1603_v6 = vadd.f32 1.0, %v3114_v52  ;;  %v2384_v47 = vmul.f32 -1.442695, %v3881_v17  ;;  %v1315_v48 = vmul.f32 %v3471_v40, %v3716_v53 }
 0x160   : > { %v3118_v22 = vpop.eup %3117  ;;  %3137 = vrcp.f32 %v1637_v9  ;;  %v3905_v49 = vadd.f32 %v3476_v42, %v1317_v11  ;;  %v3908_v16 = vadd.f32 %v3476_v42, %v1283_v41  ;;  %v1286_v26 = vmul.f32 %v3724_v21, %v3471_v40 }
 0x161   : > { %v3120_v30 = vpop.eup %3119  ;;  %3139 = vrcp.f32 %v1603_v6  ;;  %v1822_v36 = vmul.f32 %v3118_v22, %v3688_v0  ;;  %v3917_v38 = vadd.f32 %v3476_v42, %v1315_v48  ;;  %v2389_v0 = vmul.f32 -1.442695, %v3897_v13  ;;  %v4120_v48 = vld [vmem:[#allocation6_spill] sm:$0xff] }
 0x162   : > { %v3122_v46 = vpop.eup %3121  ;;  %v1793_v19 = vmul.f32 %v3120_v30, %v3691_v32  ;;  %3141 = vpow2.f32 %v2412_v12  ;;  %v1790_v32 = vmul.f32 %v3116_v60, %v3671_v14  ;;  %v2416_v14 = vmul.f32 -1.442695, %v3894_v57 }
 0x163   : > { %v3124_v43 = vpop.eup %3123  ;;  %v1825_v50 = vmul.f32 %v3122_v46, %v3698_v8  ;;  %3143 = vpow2.f32 %v2385_v28  ;;  %v2387_v15 = vmul.f32 -1.442695, %v3908_v16  ;;  %v1318_v52 = vmul.f32 %v3726_v62, %v3471_v40 }
 0x164   : > { %v3126_v10 = vpop.eup %3125  ;;  %v2599_v12 = vpack.c.bf16 %v1793_v19, %v1792_v7  ;;  %v1791_v29 = vmul.f32 %v3124_v43, %v3742_v63  ;;  %3145 = vpow2.f32 %v2417_v33  ;;  %v2419_v6 = vmul.f32 -1.442695, %v3917_v38 }
 0x165   : > { %v3128_v53 = vpop.eup %3127  ;;  %v2679_v8 = vpack.c.bf16 %v1825_v50, %v1824_v23  ;;  %v1823_v28 = vmul.f32 %v3126_v10, %v3745_v31  ;;  %3147 = vpow2.f32 %v2383_v54  ;;  %v2421_v31 = vmul.f32 -1.442695, %v3905_v49 }
 0x166   : > { %v3130_v1 = vpop.eup %3129  ;;  %2727 = vst [vmem:[%s3649_s14 + $0x38] sm:$0xff] %v2599_v12   ;;  %v2594_v4 = vpack.c.bf16 %v1791_v29, %v1790_v32  ;;  %3149 = vpow2.f32 %v2415_v3  ;;  %v1796_v3 = vmul.f32 %v3128_v53, %v3754_v20 }
 0x167   : > { %v3132_v63 = vpop.eup %3131  ;;  %2743 = vst [vmem:[%s3649_s14 + $0xb8] sm:$0xff] %v2679_v8   ;;  %v2674_v33 = vpack.c.bf16 %v1823_v28, %v1822_v36  ;;  %3151 = vpow2.f32 %v2386_v27  ;;  %v1828_v41 = vmul.f32 %v3130_v1, %v3767_v51  ;;  %v4121_v28 = vld [vmem:[#allocation7_spill] sm:$0xff] }
 0x168   : > { %v3921_v44 = vpop.eup %3133  ;;  %2726 = vst [vmem:[%s3649_s14 + $0x30] sm:$0xff] %v2594_v4   ;;  %3153 = vpow2.f32 %v2418_v39  ;;  %v1794_v21 = vmul.f32 %v3132_v63, %v3777_v18  ;;  %v3939_v39 = vadd.f32 %v3476_v42, %v1286_v26  ;;  %v3945_v18 = vld [vmem:[%s4107_s3] ss:$0 sm:$0xff] }
 0x169   : > { %v3136_v54 = vpop.eup %3135  ;;  %2742 = vst [vmem:[%s3649_s14 + $0xb0] sm:$0xff] %v2674_v33   ;;  %3155 = vpow2.f32 %v2384_v47  ;;  %v3242_v47 = vld [vmem:[%s4106_s2] ss:$0 sm:$0xff] }
 0x16a   : > { %v3138_v9 = vpop.eup %3137  ;;  %v1797_v60 = vmul.f32 %v3136_v54, %v3790_v55  ;;  %3157 = vpow2.f32 %v2416_v14  ;;  %v1284_v43 = vmul.f32 %v3242_v47, %v4120_v48  ;;  %v2390_v29 = vmul.f32 -1.442695, %v3939_v39 }
 0x16b   : > { %v3140_v11 = vpop.eup %3139  ;;  %v1829_v22 = vmul.f32 %v3138_v9, %v3800_v2  ;;  %3159 = vpow2.f32 %v2389_v0  ;;  %v1316_v1 = vmul.f32 %v3242_v47, %v4121_v28  ;;  %v1289_v4 = vmul.f32 %v3242_v47, %v3761_v58  ;;  %v4122_v0 = vld [vmem:[#allocation8_spill] sm:$0xff] }
 0x16c   : > { %v3142_v7 = vpop.eup %3141  ;;  %v2609_v27 = vpack.c.bf16 %v1797_v60, %v1796_v3  ;;  %v1795_v40 = vmul.f32 %v3140_v11, %v3807_v5  ;;  %3161 = vpow2.f32 %v2421_v31  ;;  %v3948_v5 = vadd.f32 %v3945_v18, %v1318_v52  ;;  %v4123_v52 = vld [vmem:[#allocation9_spill] sm:$0xff] }
 0x16d   : > { %v3144_v62 = vpop.eup %3143  ;;  %v2689_v20 = vpack.c.bf16 %v1829_v22, %v1828_v41  ;;  %v1635_v55 = vadd.f32 1.0, %v3142_v7  ;;  %3163 = vpow2.f32 %v2387_v15  ;;  %v3961_v33 = vadd.f32 %v3945_v18, %v1284_v43 }
 0x16e   : > { %v3146_v51 = vpop.eup %3145  ;;  %2729 = vst [vmem:[%s3649_s14 + $0x48] sm:$0xff] %v2609_v27   ;;  %v2604_v2 = vpack.c.bf16 %v1795_v40, %v1794_v21  ;;  %v1608_v30 = vadd.f32 1.0, %v3144_v62  ;;  %3165 = vpow2.f32 %v2419_v6  ;;  %v2422_v53 = vmul.f32 -1.442695, %v3948_v5  ;;  %v4124_v6 = vld [vmem:[#allocation11_spill] sm:$0xff] }
 0x16f   : > { %v3148_v23 = vpop.eup %3147  ;;  %2745 = vst [vmem:[%s3649_s14 + $0xc8] sm:$0xff] %v2689_v20   ;;  %3167 = vrcp.f32 %v1635_v55  ;;  %v1640_v46 = vadd.f32 1.0, %v3146_v51  ;;  %v1321_v31 = vmul.f32 %v3242_v47, %v4122_v0  ;;  %v1287_v26 = vmul.f32 %v3242_v47, %v3771_v25  ;;  %v4125_v20 = vld [vmem:[#allocation12_spill] sm:$0xff]  ;;  %v4126_v51 = vld [vmem:[#allocation10_spill] sm:$0xff] }
 0x170   : > { %v3150_v19 = vpop.eup %3149  ;;  %2728 = vst [vmem:[%s3649_s14 + $0x40] sm:$0xff] %v2604_v2   ;;  %3169 = vrcp.f32 %v1608_v30  ;;  %v1606_v42 = vadd.f32 1.0, %v3148_v23  ;;  %v1319_v9 = vmul.f32 %v3242_v47, %v4123_v52  ;;  %v1290_v58 = vmul.f32 %v3242_v47, %v3782_v56 }
 0x171   : > { %v3152_v50 = vpop.eup %3151  ;;  %3171 = vrcp.f32 %v1640_v46  ;;  %v1638_v10 = vadd.f32 1.0, %v3150_v19  ;;  %v1322_v11 = vmul.f32 %v3242_v47, %v4124_v6  ;;  %v3969_v7 = vadd.f32 %v3945_v18, %v1316_v1 }
 0x172   : > { %v3154_v32 = vpop.eup %3153  ;;  %3173 = vrcp.f32 %v1606_v42  ;;  %v1609_v12 = vadd.f32 1.0, %v3152_v50  ;;  %v3972_v21 = vadd.f32 %v3945_v18, %v1289_v4  ;;  %v2388_v40 = vmul.f32 -1.442695, %v3961_v33  ;;  %v4127_v50 = vld [vmem:[#allocation13_spill] sm:$0xff] }
 0x173   : > { %v3156_v36 = vpop.eup %3155  ;;  %3175 = vrcp.f32 %v1638_v10  ;;  %v1641_v8 = vadd.f32 1.0, %v3154_v32  ;;  %v3976_v62 = vadd.f32 %v3945_v18, %v1321_v31  ;;  %v1288_v56 = vmul.f32 %v3242_v47, %v4125_v20 }
 0x174   : > { %v3158_v14 = vpop.eup %3157  ;;  %3177 = vrcp.f32 %v1609_v12  ;;  %v1607_v63 = vadd.f32 1.0, %v3156_v36  ;;  %v1826_v2 = vmul.f32 %v3921_v44, %v4126_v51  ;;  %v3982_v30 = vadd.f32 %v3945_v18, %v1287_v26 }
 0x175   : > { %v3160_v54 = vpop.eup %3159  ;;  %3179 = vrcp.f32 %v1641_v8  ;;  %v1639_v15 = vadd.f32 1.0, %v3158_v14  ;;  %v3985_v23 = vadd.f32 %v3945_v18, %v1319_v9  ;;  %v3989_v42 = vadd.f32 %v3945_v18, %v1290_v58 }
 0x176   : > { %v3162_v3 = vpop.eup %3161  ;;  %3181 = vrcp.f32 %v1607_v63  ;;  %v1612_v60 = vadd.f32 1.0, %v3160_v54  ;;  %v3992_v48 = vadd.f32 %v3945_v18, %v1322_v11  ;;  %v2420_v44 = vmul.f32 -1.442695, %v3969_v7 }
 0x177   : > { %v3164_v41 = vpop.eup %3163  ;;  %3183 = vrcp.f32 %v1639_v15  ;;  %v1644_v22 = vadd.f32 1.0, %v3162_v3  ;;  %v1320_v10 = vmul.f32 %v3242_v47, %v4127_v50  ;;  %v2393_v36 = vmul.f32 -1.442695, %v3972_v21 }
 0x178   : > { %v3166_v27 = vpop.eup %3165  ;;  %v1610_v25 = vadd.f32 1.0, %v3164_v41  ;;  %3185 = vrcp.f32 %v1612_v60  ;;  %v2425_v28 = vmul.f32 -1.442695, %v3976_v62  ;;  %v2391_v1 = vmul.f32 -1.442695, %v3982_v30 }
 0x179   : > { %v3168_v55 = vpop.eup %3167  ;;  %3187 = vrcp.f32 %v1644_v22  ;;  %v2423_v14 = vmul.f32 -1.442695, %v3985_v23  ;;  %v2394_v47 = vmul.f32 -1.442695, %v3989_v42  ;;  %v1642_v41 = vadd.f32 1.0, %v3166_v27 }
 0x17a   : > { %v3170_v46 = vpop.eup %3169  ;;  %v1827_v19 = vmul.f32 %v3168_v55, %v3843_v59  ;;  %3189 = vrcp.f32 %v1610_v25  ;;  %v3998_v59 = vadd.f32 %v3945_v18, %v1288_v56 }
 0x17b   : > { %v3172_v43 = vpop.eup %3171  ;;  %3191 = vpow2.f32 %v2390_v29  ;;  %v2426_v29 = vmul.f32 -1.442695, %v3992_v48  ;;  %v1800_v0 = vmul.f32 %v3170_v46, %v3846_v37 }
 0x17c   : > { %v3174_v32 = vpop.eup %3173  ;;  %v2684_v12 = vpack.c.bf16 %v1827_v19, %v1826_v2  ;;  %3193 = vpow2.f32 %v2422_v53  ;;  %v4009_v53 = vadd.f32 %v3945_v18, %v1320_v10  ;;  %v1832_v15 = vmul.f32 %v3172_v43, %v3851_v34 }
 0x17d   : > { %v3176_v8 = vpop.eup %3175  ;;  %3195 = vpow2.f32 %v2388_v40  ;;  %v2392_v52 = vmul.f32 -1.442695, %v3998_v59  ;;  %v1798_v3 = vmul.f32 %v3174_v32, %v3854_v61 }
 0x17e   : > { %v3178_v4 = vpop.eup %3177  ;;  %2744 = vst [vmem:[%s3649_s14 + $0xc0] sm:$0xff] %v2684_v12   ;;  %3197 = vpow2.f32 %v2420_v44  ;;  %v1830_v18 = vmul.f32 %v3176_v8, %v3863_v35  ;;  %v2424_v6 = vmul.f32 -1.442695, %v4009_v53 }
 0x17f   : > { %v3180_v63 = vpop.eup %3179  ;;  %v1801_v31 = vmul.f32 %v3178_v4, %v3870_v45  ;;  %3199 = vpow2.f32 %v2393_v36 }
 0x180   : > { %v3182_v54 = vpop.eup %3181  ;;  %v1833_v26 = vmul.f32 %v3180_v63, %v3873_v24  ;;  %3201 = vpow2.f32 %v2425_v28 }
 0x181   : > { %v3184_v9 = vpop.eup %3183  ;;  %v2619_v37 = vpack.c.bf16 %v1801_v31, %v1800_v0  ;;  %v1799_v45 = vmul.f32 %v3182_v54, %v3881_v17  ;;  %3203 = vpow2.f32 %v2391_v1 }
 0x182   : > { %v2699_v60 = vpack.c.bf16 %v1833_v26, %v1832_v15  ;;  %v1831_v58 = vmul.f32 %v3184_v9, %v3894_v57  ;;  %v3186_v34 = vpop.eup %3185  ;;  %3205 = vpow2.f32 %v2423_v14 }
 0x183   : > { %2731 = vst [vmem:[%s3649_s14 + $0x58] sm:$0xff] %v2619_v37   ;;  %v2614_v24 = vpack.c.bf16 %v1799_v45, %v1798_v3  ;;  %v3188_v11 = vpop.eup %3187  ;;  %3207 = vpow2.f32 %v2394_v47  ;;  %v1804_v63 = vmul.f32 %v3186_v34, %v3897_v13 }
 0x184   : > { %2747 = vst [vmem:[%s3649_s14 + $0xd8] sm:$0xff] %v2699_v60   ;;  %v2694_v61 = vpack.c.bf16 %v1831_v58, %v1830_v18  ;;  %v3190_v17 = vpop.eup %3189  ;;  %3209 = vpow2.f32 %v2426_v29  ;;  %v1836_v54 = vmul.f32 %v3188_v11, %v3905_v49 }
 0x185   : > { %2730 = vst [vmem:[%s3649_s14 + $0x50] sm:$0xff] %v2614_v24   ;;  %v3192_v35 = vpop.eup %3191  ;;  %3211 = vpow2.f32 %v2392_v52  ;;  %v1802_v52 = vmul.f32 %v3190_v17, %v3908_v16 }
 0x186   : > { %2746 = vst [vmem:[%s3649_s14 + $0xd0] sm:$0xff] %v2694_v61   ;;  %v3194_v57 = vpop.eup %3193  ;;  %v1613_v22 = vadd.f32 1.0, %v3192_v35  ;;  %3213 = vpow2.f32 %v2424_v6 }
 0x187   : > { %v3196_v25 = vpop.eup %3195  ;;  %3215 = vrcp.f32 %v1642_v41  ;;  %v1645_v40 = vadd.f32 1.0, %v3194_v57 }
 0x188   : > { %v3198_v20 = vpop.eup %3197  ;;  %3217 = vrcp.f32 %v1613_v22  ;;  %v1611_v56 = vadd.f32 1.0, %v3196_v25 }
 0x189   : > { %v3200_v55 = vpop.eup %3199  ;;  %3219 = vrcp.f32 %v1645_v40  ;;  %v1643_v51 = vadd.f32 1.0, %v3198_v20 }
 0x18a   : > { %v3202_v27 = vpop.eup %3201  ;;  %3221 = vrcp.f32 %v1611_v56  ;;  %v1616_v2 = vadd.f32 1.0, %v3200_v55 }
 0x18b   : > { %v3204_v46 = vpop.eup %3203  ;;  %3223 = vrcp.f32 %v1643_v51  ;;  %v1648_v19 = vadd.f32 1.0, %v3202_v27 }
 0x18c   : > { %v3206_v43 = vpop.eup %3205  ;;  %3225 = vrcp.f32 %v1616_v2  ;;  %v1614_v44 = vadd.f32 1.0, %v3204_v46 }
 0x18d   : > { %v3208_v50 = vpop.eup %3207  ;;  %3227 = vrcp.f32 %v1648_v19  ;;  %v1646_v10 = vadd.f32 1.0, %v3206_v43 }
 0x18e   : > { %v3210_v32 = vpop.eup %3209  ;;  %3229 = vrcp.f32 %v1614_v44  ;;  %v1617_v12 = vadd.f32 1.0, %v3208_v50 }
 0x18f   : > { %v3212_v36 = vpop.eup %3211  ;;  %3231 = vrcp.f32 %v1646_v10  ;;  %v1649_v8 = vadd.f32 1.0, %v3210_v32 }
 0x190   : > { %v3214_v28 = vpop.eup %3213  ;;  %3233 = vrcp.f32 %v1617_v12  ;;  %v1615_v1 = vadd.f32 1.0, %v3212_v36 }
 0x191   : > { %v3216_v4 = vpop.eup %3215  ;;  %3235 = vrcp.f32 %v1649_v8  ;;  %v1647_v14 = vadd.f32 1.0, %v3214_v28 }
 0x192   : > { %v3218_v47 = vpop.eup %3217  ;;  %3237 = vrcp.f32 %v1615_v1  ;;  %v1834_v13 = vmul.f32 %v3216_v4, %v3917_v38 }
 0x193   : > { %v3220_v29 = vpop.eup %3219  ;;  %v1805_v0 = vmul.f32 %v3218_v47, %v3939_v39  ;;  %3239 = vrcp.f32 %v1647_v14 }
 0x194   : > { %v3222_v31 = vpop.eup %3221  ;;  %v1837_v15 = vmul.f32 %v3220_v29, %v3948_v5 }
 0x195   : > { %v3224_v26 = vpop.eup %3223  ;;  %v2629_v9 = vpack.c.bf16 %v1805_v0, %v1804_v63  ;;  %v1803_v3 = vmul.f32 %v3222_v31, %v3961_v33 }
 0x196   : > { %v3226_v37 = vpop.eup %3225  ;;  %v2709_v45 = vpack.c.bf16 %v1837_v15, %v1836_v54  ;;  %v1835_v39 = vmul.f32 %v3224_v26, %v3969_v7 }
 0x197   : > { %v3228_v18 = vpop.eup %3227  ;;  %2733 = vst [vmem:[%s3649_s14 + $0x68] sm:$0xff] %v2629_v9   ;;  %v2624_v49 = vpack.c.bf16 %v1803_v3, %v1802_v52  ;;  %v1808_v34 = vmul.f32 %v3226_v37, %v3972_v21 }
 0x198   : > { %v3230_v5 = vpop.eup %3229  ;;  %2749 = vst [vmem:[%s3649_s14 + $0xe8] sm:$0xff] %v2709_v45   ;;  %v2704_v60 = vpack.c.bf16 %v1835_v39, %v1834_v13  ;;  %v1840_v7 = vmul.f32 %v3228_v18, %v3976_v62 }
 0x199   : > { %v3232_v58 = vpop.eup %3231  ;;  %2732 = vst [vmem:[%s3649_s14 + $0x60] sm:$0xff] %v2624_v49   ;;  %v1806_v61 = vmul.f32 %v3230_v5, %v3982_v30 }
 0x19a   : > { %v3234_v16 = vpop.eup %3233  ;;  %2748 = vst [vmem:[%s3649_s14 + $0xe0] sm:$0xff] %v2704_v60  }
 0x19b   : > { %v3236_v33 = vpop.eup %3235  ;;  %v1809_v38 = vmul.f32 %v3234_v16, %v3989_v42  ;;  %v1838_v42 = vmul.f32 %v3232_v58, %v3985_v23 }
 0x19c   : > { %v3238_v24 = vpop.eup %3237  ;;  %v1841_v6 = vmul.f32 %v3236_v33, %v3992_v48 }
 0x19d   : > { %v3240_v11 = vpop.eup %3239  ;;  %v2639_v41 = vpack.c.bf16 %v1809_v38, %v1808_v34  ;;  %v1807_v21 = vmul.f32 %v3238_v24, %v3998_v59 }
 0x19e   : > { %v2719_v17 = vpack.c.bf16 %v1841_v6, %v1840_v7  ;;  %v1839_v35 = vmul.f32 %v3240_v11, %v4009_v53 }
 0x19f   : > { %2735 = vst [vmem:[%s3649_s14 + $0x78] sm:$0xff] %v2639_v41   ;;  %v2634_v62 = vpack.c.bf16 %v1807_v21, %v1806_v61 }
 0x1a0   : > { %2751 = vst [vmem:[%s3649_s14 + $0xf8] sm:$0xff] %v2719_v17   ;;  %v2714_v30 = vpack.c.bf16 %v1839_v35, %v1838_v42 }
 0x1a1   : > { %2734 = vst [vmem:[%s3649_s14 + $0x70] sm:$0xff] %v2634_v62  }
 0x1a2   : > { %2750 = vst [vmem:[%s3649_s14 + $0xf0] sm:$0xff] %v2714_v30  }
 0x1a3   : > { %3256 = shalt.err (!%p3253_p5)
}
 0x1a4   : > { %s3257_s12 = scalar_lea.hbm %s4049_s18, 4096  ;;  %s3261_s21 = scalar_lea.hbm %s4108_s4, 16384 }
 0x1a5   : > { %p3258_p6 = scmp.ne.s32.totalorder %s4049_s18, %s3257_s12  ;;  %p3262_p10 = scmp.lt.u32.totalorder %s4049_s18, %s4108_s4 }
 0x1a6   : > { %p3263_p11 = scmp.lt.u32.totalorder %s3261_s21, %s3257_s12  ;;  %p3265_p13 = scmp.lt.u32.totalorder %s3257_s12, %s4049_s18 }
 0x1a7   : > { %p3259_p7 = pnand %p3258_p6, %p3391_p4 }
 0x1a8   : > { %p3264_p12 = por %p3263_p11, %p3262_p10 }
 0x1a9   : > { %p3260_p9 = pneg %p3259_p7 }
 0x1aa   : > { %p3266_p0 = por %p3265_p13, %p3264_p12 }
 0x1ac   : > { %p3267_p1 = pnand %p3266_p0, %p3260_p9 }
 0x1ae   : > { %3270 = shalt.err (!%p3267_p1)
}
 0x1af   : > { %s3324_s26 = smov 64   ;;  %s3325_s29 = smov 4  }
 0x1b0   : > { %2888 = dma.vmem_to_hbm [thread:$0]  (%p3391_p4), %s4051_s30, 4096, %s4049_s18, %s4058_s7, %s3324_s26, %s3324_s26, %s3325_s29  }
 0x1b1 PF: > { %p2894_p2 = scmp.ge.s32.totalorder %s3321_s20, 2  ;;  %s2194_s5 = sand.u32 1, %s3301_s15  }
 0x1b2   : > { %s2195_s6 = scalar_lea.sflag [#allocation4], %s2194_s5 }
 0x1b3   : > { %p2891_p3 = pnand %p2894_p2, %p3398_p8 }
 0x1b5   : > { %3296 = dma.done.wait (!%p2891_p3), %s2195_s6, 4096  }
 0x1b6   : > { %3298 = vsyncadd (!%p2891_p3), %s2195_s6, 4294963200  ;;  %s17_s20 = sadd.s32 1, %s3321_s20   ;;  %s4128_s15 = smov %s3305_s16 }
 0x1b7   : > { %p14_p5 = scmp.ge.s32.totalorder %s17_s20, 6   ;;  %s4129_s16 = smov %s3309_s17 }
 0x1b8   : > { %s4130_s17 = smov %s3404_s28  ;;  %s4131_s18 = smov %s3317_s19 }
 0x1b9   : > { %s4132_s19 = smov %s4134_s23  ;;  %16 = sbr.rel (!%p14_p5) target bundleno = 4 (0x4), region = 88 }
 0x1c0   :  { %2200 = vsyncpa [#allocation4], 1 }
 0x1c1   :  { %2202 = vsyncpa [#allocation4 + $0x1], 1 }

</bundles_post_ra>
